<compile_context>
chip_gen: v5e
topology: v5e:2x2
jax: 0.10.0
libtpu: 0.0.40
codegen_flags: <defaults>
</compile_context>

<pallas_src>
import functools

import jax
import jax.numpy as jnp
from jax.experimental import pallas as pl
from jax.experimental.pallas import tpu as pltpu

LEAKY_SLOPE = 0.01   # nn.LeakyReLU default


def _leaky_relu(x):
    return jnp.where(x > 0, x, LEAKY_SLOPE * x)


def _round_up(n, m=128):
    return ((n + m - 1) // m) * m


# --------------------------------------------------------------------------
# Fused kernel: folded (upsample+pad+conv) matmul -> LeakyReLU -> quadrant
# max-pool -> 3-layer MLP -> sigmoid.  One batch block per grid step.
# --------------------------------------------------------------------------
def _fused_kernel(x_ref, wc_ref, bc_ref, w1_ref, b1_ref, w2_ref, b2_ref,
                  w3_ref, b3_ref, o_ref, *, Fq):
    x = x_ref[0]                                             # (NB, Kp)

    # upsample + zero-pad + 3x3 conv, all folded into one dense matmul; the
    # 4*Fq output lanes are the four 2x2-pool quadrants, each 128-aligned.
    y = jnp.dot(x, wc_ref[...], preferred_element_type=jnp.float32)
    y = _leaky_relu(y + bc_ref[...])                         # (NB, 4*Fq)

    # AdaptiveMaxPool2d(S//2) == 2x2 non-overlapping max (S even) ==
    # elementwise max of the four lane-aligned quadrant slices.
    pooled = jnp.maximum(
        jnp.maximum(y[:, 0 * Fq:1 * Fq], y[:, 1 * Fq:2 * Fq]),
        jnp.maximum(y[:, 2 * Fq:3 * Fq], y[:, 3 * Fq:4 * Fq]))  # (NB, Fq)

    # MLP.  The NCHW-flatten permutation and all 128-lane padding were folded
    # into w1/w2/w3 at prep time (numerically exact: padded lanes stay 0).
    h = _leaky_relu(jnp.dot(pooled, w1_ref[...],
                            preferred_element_type=jnp.float32) + b1_ref[...])
    # TODO(synk): nn.Dropout(0.4) is identity in this eval-mode forward;
    # training-mode stochastic masking (pltpu.prng_*) not implemented.
    h = _leaky_relu(jnp.dot(h, w2_ref[...],
                            preferred_element_type=jnp.float32) + b2_ref[...])
    logits = jnp.dot(h, w3_ref[...],
                     preferred_element_type=jnp.float32) + b3_ref[...]
    o_ref[0] = jax.nn.sigmoid(logits).astype(o_ref.dtype)    # (NB, 128) dense


# --------------------------------------------------------------------------
# Parameter init (PyTorch layout) and one-time kernel-layout preparation.
# --------------------------------------------------------------------------
def init_params(key, in_channels, n_classes, input_size):
    pooled = input_size // 2
    flat = n_classes * pooled * pooled
    ks = jax.random.split(key, 8)
    return {
        "conv_w": jax.random.normal(ks[0], (n_classes, in_channels, 3, 3),
                                    jnp.float32) * 0.1,
        "conv_b": jax.random.normal(ks[1], (n_classes,), jnp.float32) * 0.1,
        "fc1_w": jax.random.normal(ks[2], (96, flat), jnp.float32) * 0.05,
        "fc1_b": jax.random.normal(ks[3], (96,), jnp.float32) * 0.05,
        "fc2_w": jax.random.normal(ks[4], (64, 96), jnp.float32) * 0.05,
        "fc2_b": jax.random.normal(ks[5], (64,), jnp.float32) * 0.05,
        "fc3_w": jax.random.normal(ks[6], (n_classes, 64), jnp.float32) * 0.05,
        "fc3_b": jax.random.normal(ks[7], (n_classes,), jnp.float32) * 0.05,
    }


def prepare_params(params, *, input_size, in_spatial):
    """One-time layout prep.

    * upsample(nearest to S) + zero-pad + 3x3 conv are linear -> folded into a
      single dense matrix `wc` of shape (Kp, 4*Fq) by pushing the flattened
      NCHW basis through the reference ops.  Columns are ordered
      (quadrant q = 2*di+dj) * Fq + (ip*Wp+jp)*Cout + co, each quadrant band
      zero-padded to Fq = round_up(Hp*Wp*Cout, 128) lanes.
    * fc1_w absorbs the pooled-layout permutation (kernel index p*Cout+co ->
      PyTorch flatten index co*P+p); fc weights are transposed and zero-padded
      to 128-lane hidden dims; fc3 output is padded to 128 lanes (exact).
    """
    H0, W0 = in_spatial
    conv_w = params["conv_w"]                       # (Cout, Cin, 3, 3) OIHW
    Cout, Cin = conv_w.shape[0], conv_w.shape[1]
    S = input_size
    assert S % 2 == 0, "exact 2x2 adaptive max pool requires even input_size"
    Hp = Wp = S // 2
    P = Hp * Wp
    F = P * Cout
    Fq = _round_up(F)
    K = Cin * H0 * W0
    Kp = _round_up(K)

    # PyTorch nearest-neighbour index mapping (floor(dst * in / out)).
    rows = (jnp.arange(S) * H0) // S
    cols = (jnp.arange(S) * W0) // S

    basis = jnp.eye(K, dtype=jnp.float32).reshape(K, Cin, H0, W0)
    up = basis[:, :, rows][:, :, :, cols]                       # (K,Cin,S,S)
    conv = jax.lax.conv_general_dilated(
        up, conv_w, (1, 1), "SAME",
        dimension_numbers=("NCHW", "OIHW", "NCHW"))             # (K,Cout,S,S)
    m = conv.reshape(K, Cout, Hp, 2, Wp, 2)                     # i=2ip+di, j=2jp+dj
    m = jnp.transpose(m, (0, 3, 5, 2, 4, 1))                    # (K,di,dj,ip,jp,co)
    m = m.reshape(K, 4, F)
    m = jnp.pad(m, ((0, Kp - K), (0, 0), (0, Fq - F)))
    wc = m.reshape(Kp, 4 * Fq)

    bq = jnp.pad(jnp.tile(params["conv_b"], P), (0, Fq - F))    # (Fq,)
    bc = jnp.tile(bq, 4)[None, :]                               # (1, 4*Fq)

    d1 = params["fc1_w"].shape[0]                   # 96
    d2 = params["fc2_w"].shape[0]                   # 64
    n_out = params["fc3_w"].shape[0]
    d1p, d2p, n_out_p = _round_up(d1), _round_up(d2), _round_up(n_out)

    # Fold the pooled-layout permutation into fc1_w.
    idx = jnp.arange(F)
    perm = (idx % Cout) * P + idx // Cout           # kernel idx -> torch idx
    w1 = params["fc1_w"].T[perm]                    # (F, d1)
    w1 = jnp.pad(w1, ((0, Fq - F), (0, d1p - d1)))
    b1 = jnp.pad(params["fc1_b"], (0, d1p - d1))[None, :]
    w2 = jnp.pad(params["fc2_w"].T, ((0, d1p - d1), (0, d2p - d2)))
    b2 = jnp.pad(params["fc2_b"], (0, d2p - d2))[None, :]
    w3 = jnp.pad(params["fc3_w"].T, ((0, d2p - d2), (0, n_out_p - n_out)))
    b3 = jnp.pad(params["fc3_b"], (0, n_out_p - n_out))[None, :]

    return {"wc": wc, "bc": bc, "w1": w1, "b1": b1, "w2": w2, "b2": b2,
            "w3": w3, "b3": b3}


# --------------------------------------------------------------------------
# Forward wrapper
# --------------------------------------------------------------------------
def classification_arm_forward(prep, x, *, n_classes):
    """x: (N, Cin, H, W) float32, NCHW (PyTorch convention)."""
    N, Cin, H, W = x.shape
    K = Cin * H * W
    Kp = prep["wc"].shape[0]
    assert Kp == _round_up(K), "input spatial/channels do not match prep"
    n_out_p = prep["b3"].shape[1]
    Fq = prep["bc"].shape[1] // 4

    x_flat = x.reshape(N, K)
    if Kp > K:
        x_flat = jnp.pad(x_flat, ((0, 0), (0, Kp - K)))

    # Batch blocking: >=2 grid steps for small N (v7x megacore sharding),
    # capped block size for large N.  Pad batch to G*NB so every block is
    # exact and (8,128)-layout clean (padded rows are zeros, sliced off).
    NB = max(1, min(128, pl.cdiv(N, 2)))
    G = pl.cdiv(N, NB)
    Npad = G * NB
    if Npad > N:
        x_flat = jnp.pad(x_flat, ((0, Npad - N), (0, 0)))
    x_blk = x_flat.reshape(G, NB, Kp)

    weights = [prep[k] for k in ("wc", "bc", "w1", "b1", "w2", "b2",
                                 "w3", "b3")]

    def _whole(arr):                                  # untiled resident weight
        zeros = (0,) * arr.ndim
        return pl.BlockSpec(arr.shape, lambda b, z=zeros: z)

    out = pl.pallas_call(
        functools.partial(_fused_kernel, Fq=Fq),
        out_shape=jax.ShapeDtypeStruct((G, NB, n_out_p), jnp.float32),
        grid=(G,),
        in_specs=[pl.BlockSpec((1, NB, Kp), lambda b: (b, 0, 0))]
                 + [_whole(w) for w in weights],
        out_specs=pl.BlockSpec((1, NB, n_out_p), lambda b: (b, 0, 0)),
        compiler_params=pltpu.CompilerParams(
            dimension_semantics=("parallel",)),
    )(x_blk, *weights)

    return out.reshape(Npad, n_out_p)[:N, :n_classes]


# --------------------------------------------------------------------------
# Pure-JAX reference (PyTorch-layout params) for the correctness check.
# --------------------------------------------------------------------------
def reference_forward(params, x, *, input_size):
    N, Cin, H, W = x.shape
    S = input_size
    Hp = Wp = S // 2
    rows = (jnp.arange(S) * H) // S
    cols = (jnp.arange(S) * W) // S
    xu = x[:, :, rows][:, :, :, cols]
    y = jax.lax.conv_general_dilated(
        xu, params["conv_w"], (1, 1), "SAME",
        dimension_numbers=("NCHW", "OIHW", "NCHW"))
    y = y + params["conv_b"][None, :, None, None]
    y = _leaky_relu(y)
    y = y.reshape(N, -1, Hp, 2, Wp, 2).max(axis=(3, 5))
    f = y.reshape(N, -1)
    h = _leaky_relu(f @ params["fc1_w"].T + params["fc1_b"])
    h = _leaky_relu(h @ params["fc2_w"].T + params["fc2_b"])
    o = h @ params["fc3_w"].T + params["fc3_b"]
    return jax.nn.sigmoid(o)


if __name__ == "__main__":
    N, in_channels, n_classes = 2, 4, 3
    input_size = 16                       # even -> exact 2x2 adaptive pooling
    Hin = Win = 8                         # "deepest encoding layer" spatial

    key = jax.random.PRNGKey(0)
    k_param, k_x = jax.random.split(key)
    params = init_params(k_param, in_channels, n_classes, input_size)
    prep = prepare_params(params, input_size=input_size,
                          in_spatial=(Hin, Win))     # hoisted once
    x = jax.random.normal(k_x, (N, in_channels, Hin, Win), jnp.float32)

    fwd = jax.jit(functools.partial(classification_arm_forward,
                                    n_classes=n_classes))
    out = jax.block_until_ready(fwd(prep, x))

    ref = reference_forward(params, x, input_size=input_size)
    assert out.shape == (N, n_classes), out.shape
    assert jnp.allclose(out, ref, atol=5e-5, rtol=5e-5), (out, ref)

    print("KERNEL_OK")
</pallas_src>

<mosaic_0001>
module attributes {stable_mosaic.version = 11 : i64} {
  func.func @_fused_kernel(%arg0: i32, %arg1: memref<1x1x256xf32, #tpu.memory_space<vmem>>, %arg2: memref<256x1024xf32, #tpu.memory_space<vmem>>, %arg3: memref<1x1024xf32, #tpu.memory_space<vmem>>, %arg4: memref<256x128xf32, #tpu.memory_space<vmem>>, %arg5: memref<1x128xf32, #tpu.memory_space<vmem>>, %arg6: memref<128x128xf32, #tpu.memory_space<vmem>>, %arg7: memref<1x128xf32, #tpu.memory_space<vmem>>, %arg8: memref<128x128xf32, #tpu.memory_space<vmem>>, %arg9: memref<1x128xf32, #tpu.memory_space<vmem>>, %arg10: memref<1x1x128xf32, #tpu.memory_space<vmem>>) attributes {dimension_semantics = [#tpu.dimension_semantics<parallel>], iteration_bounds = array<i64: 2>, scalar_prefetch = 0 : i64, scratch_operands = 0 : i64, tpu.core_type = #tpu.core_type<tc>, window_params = [{transform_indices = @transform_0, window_bounds = array<i64: 1, 1, 256>}, {pipeline_mode = #tpu.pipeline_mode<synchronous>, transform_indices = @transform_1, window_bounds = array<i64: 256, 1024>}, {pipeline_mode = #tpu.pipeline_mode<synchronous>, transform_indices = @transform_2, window_bounds = array<i64: 1, 1024>}, {pipeline_mode = #tpu.pipeline_mode<synchronous>, transform_indices = @transform_3, window_bounds = array<i64: 256, 128>}, {pipeline_mode = #tpu.pipeline_mode<synchronous>, transform_indices = @transform_4, window_bounds = array<i64: 1, 128>}, {pipeline_mode = #tpu.pipeline_mode<synchronous>, transform_indices = @transform_5, window_bounds = array<i64: 128, 128>}, {pipeline_mode = #tpu.pipeline_mode<synchronous>, transform_indices = @transform_6, window_bounds = array<i64: 1, 128>}, {pipeline_mode = #tpu.pipeline_mode<synchronous>, transform_indices = @transform_7, window_bounds = array<i64: 128, 128>}, {pipeline_mode = #tpu.pipeline_mode<synchronous>, transform_indices = @transform_8, window_bounds = array<i64: 1, 128>}, {transform_indices = @transform_9, window_bounds = array<i64: 1, 1, 128>}]} {
    %c0 = arith.constant 0 : index
    %c0_0 = arith.constant 0 : index
    %c0_1 = arith.constant 0 : index
    %0 = vector.load %arg1[%c0, %c0_0, %c0_1] : memref<1x1x256xf32, #tpu.memory_space<vmem>>, vector<1x1x256xf32>
    %1 = vector.shape_cast %0 : vector<1x1x256xf32> to vector<1x256xf32>
    %c0_2 = arith.constant 0 : index
    %c0_3 = arith.constant 0 : index
    %2 = vector.load %arg2[%c0_2, %c0_3] : memref<256x1024xf32, #tpu.memory_space<vmem>>, vector<256x1024xf32>
    %cst = arith.constant dense<0.000000e+00> : vector<1x1024xf32>
    %3 = tpu.matmul %1, %2, %cst {dimension_numbers = #tpu.dot_dimension_numbers<[1], [0], [0], [1], [0, 0, 1, 1], [], []>} : vector<1x256xf32>, vector<256x1024xf32>, vector<1x1024xf32> -> vector<1x1024xf32>
    %c0_4 = arith.constant 0 : index
    %c0_5 = arith.constant 0 : index
    %4 = vector.load %arg3[%c0_4, %c0_5] : memref<1x1024xf32, #tpu.memory_space<vmem>>, vector<1x1024xf32>
    %5 = arith.addf %3, %4 : vector<1x1024xf32>
    %cst_6 = arith.constant 0.000000e+00 : f32
    %6 = vector.broadcast %cst_6 : f32 to vector<1x1024xf32>
    %7 = arith.cmpf ogt, %5, %6 : vector<1x1024xf32>
    %cst_7 = arith.constant 0.00999999977 : f32
    %8 = vector.broadcast %cst_7 : f32 to vector<1x1024xf32>
    %9 = arith.mulf %8, %5 : vector<1x1024xf32>
    %10 = arith.select %7, %5, %9 : vector<1x1024xi1>, vector<1x1024xf32>
    %11 = vector.extract_strided_slice %10 {offsets = [0, 0], sizes = [1, 256], strides = [1, 1]} : vector<1x1024xf32> to vector<1x256xf32>
    %12 = vector.extract_strided_slice %10 {offsets = [0, 256], sizes = [1, 256], strides = [1, 1]} : vector<1x1024xf32> to vector<1x256xf32>
    %13 = arith.maximumf %11, %12 : vector<1x256xf32>
    %14 = vector.extract_strided_slice %10 {offsets = [0, 512], sizes = [1, 256], strides = [1, 1]} : vector<1x1024xf32> to vector<1x256xf32>
    %15 = vector.extract_strided_slice %10 {offsets = [0, 768], sizes = [1, 256], strides = [1, 1]} : vector<1x1024xf32> to vector<1x256xf32>
    %16 = arith.maximumf %14, %15 : vector<1x256xf32>
    %17 = arith.maximumf %13, %16 : vector<1x256xf32>
    %c0_8 = arith.constant 0 : index
    %c0_9 = arith.constant 0 : index
    %18 = vector.load %arg4[%c0_8, %c0_9] : memref<256x128xf32, #tpu.memory_space<vmem>>, vector<256x128xf32>
    %cst_10 = arith.constant dense<0.000000e+00> : vector<1x128xf32>
    %19 = tpu.matmul %17, %18, %cst_10 {dimension_numbers = #tpu.dot_dimension_numbers<[1], [0], [0], [1], [0, 0, 1, 1], [], []>} : vector<1x256xf32>, vector<256x128xf32>, vector<1x128xf32> -> vector<1x128xf32>
    %c0_11 = arith.constant 0 : index
    %c0_12 = arith.constant 0 : index
    %20 = vector.load %arg5[%c0_11, %c0_12] : memref<1x128xf32, #tpu.memory_space<vmem>>, vector<1x128xf32>
    %21 = arith.addf %19, %20 : vector<1x128xf32>
    %cst_13 = arith.constant 0.000000e+00 : f32
    %22 = vector.broadcast %cst_13 : f32 to vector<1x128xf32>
    %23 = arith.cmpf ogt, %21, %22 : vector<1x128xf32>
    %cst_14 = arith.constant 0.00999999977 : f32
    %24 = vector.broadcast %cst_14 : f32 to vector<1x128xf32>
    %25 = arith.mulf %24, %21 : vector<1x128xf32>
    %26 = arith.select %23, %21, %25 : vector<1x128xi1>, vector<1x128xf32>
    %c0_15 = arith.constant 0 : index
    %c0_16 = arith.constant 0 : index
    %27 = vector.load %arg6[%c0_15, %c0_16] : memref<128x128xf32, #tpu.memory_space<vmem>>, vector<128x128xf32>
    %cst_17 = arith.constant dense<0.000000e+00> : vector<1x128xf32>
    %28 = tpu.matmul %26, %27, %cst_17 {dimension_numbers = #tpu.dot_dimension_numbers<[1], [0], [0], [1], [0, 0, 1, 1], [], []>} : vector<1x128xf32>, vector<128x128xf32>, vector<1x128xf32> -> vector<1x128xf32>
    %c0_18 = arith.constant 0 : index
    %c0_19 = arith.constant 0 : index
    %29 = vector.load %arg7[%c0_18, %c0_19] : memref<1x128xf32, #tpu.memory_space<vmem>>, vector<1x128xf32>
    %30 = arith.addf %28, %29 : vector<1x128xf32>
    %cst_20 = arith.constant 0.000000e+00 : f32
    %31 = vector.broadcast %cst_20 : f32 to vector<1x128xf32>
    %32 = arith.cmpf ogt, %30, %31 : vector<1x128xf32>
    %cst_21 = arith.constant 0.00999999977 : f32
    %33 = vector.broadcast %cst_21 : f32 to vector<1x128xf32>
    %34 = arith.mulf %33, %30 : vector<1x128xf32>
    %35 = arith.select %32, %30, %34 : vector<1x128xi1>, vector<1x128xf32>
    %c0_22 = arith.constant 0 : index
    %c0_23 = arith.constant 0 : index
    %36 = vector.load %arg8[%c0_22, %c0_23] : memref<128x128xf32, #tpu.memory_space<vmem>>, vector<128x128xf32>
    %cst_24 = arith.constant dense<0.000000e+00> : vector<1x128xf32>
    %37 = tpu.matmul %35, %36, %cst_24 {dimension_numbers = #tpu.dot_dimension_numbers<[1], [0], [0], [1], [0, 0, 1, 1], [], []>} : vector<1x128xf32>, vector<128x128xf32>, vector<1x128xf32> -> vector<1x128xf32>
    %c0_25 = arith.constant 0 : index
    %c0_26 = arith.constant 0 : index
    %38 = vector.load %arg9[%c0_25, %c0_26] : memref<1x128xf32, #tpu.memory_space<vmem>>, vector<1x128xf32>
    %39 = arith.addf %37, %38 : vector<1x128xf32>
    %40 = arith.negf %39 : vector<1x128xf32>
    %41 = math.exp %40 : vector<1x128xf32>
    %cst_27 = arith.constant 1.000000e+00 : f32
    %42 = vector.broadcast %cst_27 : f32 to vector<1x128xf32>
    %43 = arith.addf %42, %41 : vector<1x128xf32>
    %44 = arith.divf %42, %43 : vector<1x128xf32>
    %c0_28 = arith.constant 0 : index
    %c0_29 = arith.constant 0 : index
    %c0_30 = arith.constant 0 : index
    %45 = vector.load %arg10[%c0_28, %c0_29, %c0_30] : memref<1x1x128xf32, #tpu.memory_space<vmem>>, vector<1x1x128xf32>
    %46 = vector.shape_cast %45 : vector<1x1x128xf32> to vector<1x128xf32>
    %47 = vector.shape_cast %44 : vector<1x128xf32> to vector<1x1x128xf32>
    tpu.vector_store %arg10[%c0_28, %c0_29, %c0_30], %47 {strides = array<i32>} : memref<1x1x128xf32, #tpu.memory_space<vmem>>, vector<1x1x128xf32>,
    return
  }
  func.func @transform_0(%arg0: i32) -> (i32, i32, i32) {
    %c0_i32 = arith.constant 0 : i32
    %c0_i32_0 = arith.constant 0 : i32
    %c0_i32_1 = arith.constant 0 : i32
    return %arg0, %c0_i32, %c0_i32_0 : i32, i32, i32
  }
  func.func @transform_1(%arg0: i32) -> (i32, i32) {
    %c0_i32 = arith.constant 0 : i32
    %c0_i32_0 = arith.constant 0 : i32
    %c0_i32_1 = arith.constant 0 : i32
    return %c0_i32, %c0_i32_0 : i32, i32
  }
  func.func @transform_2(%arg0: i32) -> (i32, i32) {
    %c0_i32 = arith.constant 0 : i32
    %c0_i32_0 = arith.constant 0 : i32
    %c0_i32_1 = arith.constant 0 : i32
    return %c0_i32, %c0_i32_0 : i32, i32
  }
  func.func @transform_3(%arg0: i32) -> (i32, i32) {
    %c0_i32 = arith.constant 0 : i32
    %c0_i32_0 = arith.constant 0 : i32
    %c0_i32_1 = arith.constant 0 : i32
    return %c0_i32, %c0_i32_0 : i32, i32
  }
  func.func @transform_4(%arg0: i32) -> (i32, i32) {
    %c0_i32 = arith.constant 0 : i32
    %c0_i32_0 = arith.constant 0 : i32
    %c0_i32_1 = arith.constant 0 : i32
    return %c0_i32, %c0_i32_0 : i32, i32
  }
  func.func @transform_5(%arg0: i32) -> (i32, i32) {
    %c0_i32 = arith.constant 0 : i32
    %c0_i32_0 = arith.constant 0 : i32
    %c0_i32_1 = arith.constant 0 : i32
    return %c0_i32, %c0_i32_0 : i32, i32
  }
  func.func @transform_6(%arg0: i32) -> (i32, i32) {
    %c0_i32 = arith.constant 0 : i32
    %c0_i32_0 = arith.constant 0 : i32
    %c0_i32_1 = arith.constant 0 : i32
    return %c0_i32, %c0_i32_0 : i32, i32
  }
  func.func @transform_7(%arg0: i32) -> (i32, i32) {
    %c0_i32 = arith.constant 0 : i32
    %c0_i32_0 = arith.constant 0 : i32
    %c0_i32_1 = arith.constant 0 : i32
    return %c0_i32, %c0_i32_0 : i32, i32
  }
  func.func @transform_8(%arg0: i32) -> (i32, i32) {
    %c0_i32 = arith.constant 0 : i32
    %c0_i32_0 = arith.constant 0 : i32
    %c0_i32_1 = arith.constant 0 : i32
    return %c0_i32, %c0_i32_0 : i32, i32
  }
  func.func @transform_9(%arg0: i32) -> (i32, i32, i32) {
    %c0_i32 = arith.constant 0 : i32
    %c0_i32_0 = arith.constant 0 : i32
    %c0_i32_1 = arith.constant 0 : i32
    return %arg0, %c0_i32, %c0_i32_0 : i32, i32, i32
  }
}

</mosaic_0001>

<bundles_post_ra>
// kernel: classification_arm_forward.1
= control target key start
LH: loop header
LB: loop body
LE: loop exit
PB: predicated region body
PF: predicated region fallthrough
CT: control target
= control target key end

     0   :  { %s1843_s0 = inlined_call_operand.vmem [shape: f32[2,1,256], index: 0, kind: input, shape index: {}]   ;;  %s1844_s1 = inlined_call_operand.hbm [shape: f32[256,1024], index: 1, kind: input, shape index: {}]   ;;  %s1845_s2 = inlined_call_operand.vmem [shape: f32[1,1024], index: 2, kind: input, shape index: {}]   ;;  %s1846_s3 = inlined_call_operand.hbm [shape: f32[256,128], index: 3, kind: input, shape index: {}]   ;;  %s1847_s4 = inlined_call_operand.vmem [shape: f32[1,128], index: 4, kind: input, shape index: {}]   ;;  %s1848_s5 = inlined_call_operand.hbm [shape: f32[128,128], index: 5, kind: input, shape index: {}]   ;;  %s1849_s6 = inlined_call_operand.vmem [shape: f32[1,128], index: 6, kind: input, shape index: {}]   ;;  %s1850_s7 = inlined_call_operand.hbm [shape: f32[128,128], index: 7, kind: input, shape index: {}]   ;;  %s1851_s8 = inlined_call_operand.vmem [shape: f32[1,128], index: 8, kind: input, shape index: {}]   ;;  %s1852_s9 = inlined_call_operand.hbm [shape: f32[2,1,128], index: 9, kind: output, shape index: {}]  }
   0x1   :  { %1857 = sst [smem:[#allocation19_spill]] %s1844_s1 }
   0x2   :  { %1858 = sst [smem:[#allocation20_spill]] %s1846_s3 }
   0x3   :  { %14 = vsyncpa [#allocation3], 0 }
   0x4   :  { %15 = vsyncpa [#allocation6], 0 }
   0x5   :  { %16 = vsyncpa [#allocation9], 0 }
   0x6   :  { %17 = vsyncpa [#allocation4], 0 }
   0x7   :  { %19 = vsyncpa [#allocation4 + $0x1], 0  ;;  %s1664_s30 = smov 0   ;;  %s1666_s10 = smov 0  }
   0x8   :  { %s1668_s11 = smov 0   ;;  %s1670_s12 = smov 0  }
   0x9 LB: > { %1859 = sst [smem:[#allocation15_spill]] %s1600_s11  ;;  %s1685_s13 = sadd.s32 4294967295, %s1604_s12   ;;  %s1604_s12 = sphi %s1670_s12, %s1870_s12   ;;  %s1600_s11 = sphi %s1668_s11, %s1872_s11   ;;  %s1596_s10 = sphi %s1666_s10, %s1874_s10   ;;  %s1592_s30 = sphi %s1664_s30, %s1873_s30  }
   0xa   : > { %s1306_s14 = sadd.s32 4294967294, %s1604_s12   ;;  %s1689_s15 = sadd.s32 1, %s1604_s12  }
   0xb   : > { %1860 = sst [smem:[#allocation16_spill]] %s1689_s15  ;;  %s226_s16 = sadd.s32 1, %s1600_s11 }
   0xc   : > { %s223_s17 = ssub.s32 %s1604_s12, %s1689_s15  ;;  %p236_p0 = scmp.ne.s32.totalorder %s1600_s11, %s1596_s10 }
   0xd   : > { %p224_p1 = scmp.eq.s32.totalorder %s223_s17, 0  ;;  %p237_p2 = scmp.eq.s32.totalorder %s1685_s13, 1 }
   0xe   : > { %p242_p3 = scmp.ne.s32.totalorder %s1596_s10, %s1592_s30  ;;  %p243_p4 = scmp.eq.s32.totalorder %s1306_s14, 1 }
   0xf   : > { %s1700_s18 = scalar_select %p224_p1, %s1600_s11, %s226_s16  }
  0x10   : > { %p1702_p5 = por %p237_p2, %p236_p0  ;;  %p1706_p6 = por %p243_p4, %p242_p3 }
  0x11   : > { %1861 = sst [smem:[#allocation17_spill]] %s1700_s18  ;;  %p1307_p7 = scmp.ge.s32.totalorder %s1604_s12, 1 }
  0x12   : > { %s1863_s20 = scalar_select %p1706_p6, 1, 0 }
  0x13   : > { %p250_p8 = scmp.lt.s32.totalorder %s1604_s12, 3  ;;  %p1357_p9 = scmp.eq.s32.totalorder %s1685_s13, 0 }
  0x14   : > { %1864 = sst [smem:[#allocation18_spill]] %s1863_s20  ;;  %s1606_s25 = smov [#allocation5]  }
  0x15   : > { %p1713_p10 = pnand %p1307_p7, %p250_p8  ;;  %s1866_s3 = sld [smem:[#allocation20_spill]] }
  0x16   : > { %s280_s26 = sshll.u32 %s1606_s25, 4  ;;  %s1868_s1 = sld [smem:[#allocation19_spill]]  ;;  %s281_s26 = int_to_ptr.vmem [resolvable:$true] %s280_s26 }
  0x17   : > { %p1340_p11 = pneg %p1713_p10  ;;  %s1607_s16 = smov 128  }
  0x18   : > { %s1608_s17 = smov 8   ;;  %s1609_s22 = smov [#allocation2]  }
  0x19   : > { %p1724_p12 = pnand %p1357_p9, %p1340_p11  ;;  %s263_s23 = sshll.u32 %s1609_s22, 4  ;;  %s264_s23 = int_to_ptr.vmem [resolvable:$true] %s263_s23 }
  0x1a   : > { %s1610_s25 = smov 1024   ;;  %s295_s28 = sshll.u32 %s1848_s5, 4  ;;  %s296_s28 = int_to_ptr.hbm [resolvable:$true] %s295_s28 }
  0x1b   : > { %s278_s24 = sshll.u32 %s1866_s3, 4  ;;  %s1611_s3 = smov 64   ;;  %s279_s24 = int_to_ptr.hbm [resolvable:$true] %s278_s24 }
  0x1c   : > { %s261_s14 = sshll.u32 %s1868_s1, 4  ;;  %s1612_s29 = smov [#allocation7]   ;;  %s262_s14 = int_to_ptr.hbm [resolvable:$true] %s261_s14 }
  0x1d   : > { %1346 = dma.hbm_to_vmem [thread:$0]  (!%p1724_p12), %s279_s24, 4096, %s281_s26, [#allocation6], %s1607_s16, %s1607_s16, %s1608_s17  }
  0x1e   : > { %1343 = dma.hbm_to_vmem [thread:$0]  (!%p1724_p12), %s262_s14, 32768, %s264_s23, [#allocation3], %s1610_s25, %s1610_s25, %s1611_s3  }
  0x1f   : > { %s297_s1 = sshll.u32 %s1612_s29, 4  ;;  %s312_s24 = sshll.u32 %s1850_s7, 4  ;;  %s298_s1 = int_to_ptr.vmem [resolvable:$true] %s297_s1  ;;  %s313_s24 = int_to_ptr.hbm [resolvable:$true] %s312_s24 }
  0x20   : > { %1349 = dma.hbm_to_vmem [thread:$0]  (!%p1724_p12), %s296_s28, 2048, %s298_s1, [#allocation6], %s1607_s16, %s1607_s16, %s1608_s17  }
  0x21   : > { %s1613_s26 = smov [#allocation8]   ;;  %340 = sbr.rel (%p1713_p10) target bundleno = 754 (0x2f2), region = 56 }
  0x22   : > { %s314_s22 = sshll.u32 %s1613_s26, 4  ;;  %s315_s22 = int_to_ptr.vmem [resolvable:$true] %s314_s22 }
  0x23   : > { %1352 = dma.hbm_to_vmem [thread:$0]  (!%p1724_p12), %s313_s24, 2048, %s315_s22, [#allocation9], %s1607_s16, %s1607_s16, %s1608_s17  }
  0x26   : > { %1575 = dma.done.wait (%p1357_p9), [#allocation3], 32768  }
  0x27   : > { %1577 = vsyncadd (%p1357_p9), [#allocation3], 4294934528 }
  0x28   : > { %1579 = dma.done.wait (%p1357_p9), [#allocation6], 6144  }
  0x29   : > { %1581 = vsyncadd (%p1357_p9), [#allocation6], 4294961152 }
  0x2a   : > { %1583 = dma.done.wait (%p1357_p9), [#allocation9], 2048  }
  0x2b   : > { %1585 = vsyncadd (%p1357_p9), [#allocation9], 4294965248  ;;  %v515_v0 = vld [vmem:[#allocation2 + $0x3c0] sm:$0xff]  ;;  %v516_v1 = vld [vmem:[#allocation2 + $0x3c8] sm:$0xff]  ;;  %p390_p13 = scmp.lt.s32.totalorder %s1685_s13, 1  ;;  %s388_s28 = sand.u32 1, %s1596_s10  }
  0x2c   : > { %v507_v2 = vld [vmem:[#allocation2 + $0x380] sm:$0xff]  ;;  %674 = vmatpush.msra.mxu0 %v515_v0  ;;  %714 = vmatpush.msra.mxu2 %v516_v1  ;;  %v508_v4 = vld [vmem:[#allocation2 + $0x388] sm:$0xff]  ;;  %v517_v62 = vld [vmem:[#allocation2 + $0x3d0] sm:$0xff]  ;;  %s1206_s26 = scalar_lea.hbm %s1852_s9, %s1685_s13  ;;  %s389_s22 = scalar_lea.vmem [#allocation10], %s388_s28 }
  0x2d   : > { %v643_v3 = vld [vmem:[#allocation2 + $0x7c0] sm:$0xff]  ;;  %v644_v5 = vld [vmem:[#allocation2 + $0x7c8] sm:$0xff]  ;;  %v518_v63 = vld [vmem:[#allocation2 + $0x3d8] sm:$0xff]  ;;  %s1763_s1 = scalar_select %p390_p13, %s1685_s13, 1 }
  0x2e   : > { %694 = vmatpush.msra.mxu1 %v643_v3  ;;  %734 = vmatpush.msra.mxu3 %v644_v5  ;;  %v499_v6 = vld [vmem:[#allocation2 + $0x340] sm:$0xff]  ;;  %v500_v8 = vld [vmem:[#allocation2 + $0x348] sm:$0xff]  ;;  %v645_v3 = vld [vmem:[#allocation2 + $0x7d0] sm:$0xff]  ;;  %s1198_s11 = scalar_lea.sflag [#allocation4], %s388_s28  ;;  %s1550_s21 = scalar_lea.hbm %s1852_s9, 2 }
  0x2f   : > { %v635_v7 = vld [vmem:[#allocation2 + $0x780] sm:$0xff]  ;;  %675 = vmatpush.msra.mxu0 %v507_v2  ;;  %715 = vmatpush.msra.mxu2 %v508_v4  ;;  %v636_v9 = vld [vmem:[#allocation2 + $0x788] sm:$0xff]  ;;  %v509_v2 = vld [vmem:[#allocation2 + $0x390] sm:$0xff]  ;;  %s1318_s3 = sshll.u32 %s1763_s1, 1  ;;  %s1208_s1 = sshll.u32 %s389_s22, 4  ;;  %s1209_s1 = int_to_ptr.vmem [resolvable:$true] %s1208_s1 }
  0x30   : > { %v627_v10 = vld [vmem:[#allocation2 + $0x740] sm:$0xff]  ;;  %695 = vmatpush.msra.mxu1 %v635_v7  ;;  %735 = vmatpush.msra.mxu3 %v636_v9  ;;  %v492_v12 = vld [vmem:[#allocation2 + $0x308] sm:$0xff]  ;;  %v510_v4 = vld [vmem:[#allocation2 + $0x398] sm:$0xff]  ;;  %s393_s18 = scalar_lea.vmem %s1843_s0, %s1318_s3  ;;  %s1210_s3 = sshll.u32 %s1206_s26, 4  ;;  %s1211_s3 = int_to_ptr.hbm [resolvable:$true] %s1210_s3 }
  0x31   : > { %v491_v11 = vld [vmem:[#allocation2 + $0x300] sm:$0xff]  ;;  %v628_v13 = vld [vmem:[#allocation2 + $0x748] sm:$0xff]  ;;  %676 = vmatpush.msra.mxu0 %v499_v6  ;;  %716 = vmatpush.msra.mxu2 %v500_v8  ;;  %v646_v5 = vld [vmem:[#allocation2 + $0x7d8] sm:$0xff]  ;;  %s1544_s13 = sshra.s32 %s1211_s3, 4  ;;  %s1545_s13 = int_to_ptr.hbm [resolvable:$true] %s1544_s13 }
  0x32   : > { %v619_v14 = vld [vmem:[#allocation2 + $0x700] sm:$0xff]  ;;  %v620_v15 = vld [vmem:[#allocation2 + $0x708] sm:$0xff]  ;;  %696 = vmatpush.msra.mxu1 %v627_v10  ;;  %736 = vmatpush.msra.mxu3 %v628_v13  ;;  %v501_v6 = vld [vmem:[#allocation2 + $0x350] sm:$0xff]  ;;  %s1546_s15 = scalar_lea.hbm %s1545_s13, 1  ;;  %p1551_p3 = scmp.lt.s32.totalorder %s1545_s13, %s1852_s9 }
  0x33   : > { %v483_v16 = vld [vmem:[#allocation2 + $0x2c0] sm:$0xff]  ;;  %v484_v17 = vld [vmem:[#allocation2 + $0x2c8] sm:$0xff]  ;;  %677 = vmatpush.msra.mxu0 %v491_v11  ;;  %717 = vmatpush.msra.mxu2 %v492_v12  ;;  %v637_v7 = vld [vmem:[#allocation2 + $0x790] sm:$0xff]  ;;  %p1547_p0 = scmp.ne.s32.totalorder %s1545_s13, %s1546_s15  ;;  %p1552_p4 = scmp.lt.s32.totalorder %s1550_s21, %s1546_s15 }
  0x34   : > { %v611_v18 = vld [vmem:[#allocation2 + $0x6c0] sm:$0xff]  ;;  %v612_v19 = vld [vmem:[#allocation2 + $0x6c8] sm:$0xff]  ;;  %697 = vmatpush.msra.mxu1 %v619_v14  ;;  %737 = vmatpush.msra.mxu3 %v620_v15  ;;  %v502_v8 = vld [vmem:[#allocation2 + $0x358] sm:$0xff] }
  0x35   : > { %v475_v20 = vld [vmem:[#allocation2 + $0x280] sm:$0xff]  ;;  %v476_v21 = vld [vmem:[#allocation2 + $0x288] sm:$0xff]  ;;  %678 = vmatpush.msra.mxu0 %v483_v16  ;;  %718 = vmatpush.msra.mxu2 %v484_v17  ;;  %v638_v9 = vld [vmem:[#allocation2 + $0x798] sm:$0xff]  ;;  %p1548_p1 = pnand %p1547_p0, %p1702_p5  ;;  %p1553_p7 = por %p1552_p4, %p1551_p3 }
  0x36   : > { %v603_v22 = vld [vmem:[#allocation2 + $0x680] sm:$0xff]  ;;  %v604_v23 = vld [vmem:[#allocation2 + $0x688] sm:$0xff]  ;;  %698 = vmatpush.msra.mxu1 %v611_v18  ;;  %738 = vmatpush.msra.mxu3 %v612_v19  ;;  %v493_v10 = vld [vmem:[#allocation2 + $0x310] sm:$0xff] }
  0x37   : > { %v467_v24 = vld [vmem:[#allocation2 + $0x240] sm:$0xff]  ;;  %v468_v25 = vld [vmem:[#allocation2 + $0x248] sm:$0xff]  ;;  %679 = vmatpush.msra.mxu0 %v475_v20  ;;  %719 = vmatpush.msra.mxu2 %v476_v21  ;;  %v629_v11 = vld [vmem:[#allocation2 + $0x750] sm:$0xff]  ;;  %p1549_p2 = pneg %p1548_p1 }
  0x38   : > { %v595_v26 = vld [vmem:[#allocation2 + $0x640] sm:$0xff]  ;;  %v596_v27 = vld [vmem:[#allocation2 + $0x648] sm:$0xff]  ;;  %699 = vmatpush.msra.mxu1 %v603_v22  ;;  %739 = vmatpush.msra.mxu3 %v604_v23  ;;  %v494_v12 = vld [vmem:[#allocation2 + $0x318] sm:$0xff] }
  0x39   : > { %v459_v28 = vld [vmem:[#allocation2 + $0x200] sm:$0xff]  ;;  %v460_v29 = vld [vmem:[#allocation2 + $0x208] sm:$0xff]  ;;  %680 = vmatpush.msra.mxu0 %v467_v24  ;;  %720 = vmatpush.msra.mxu2 %v468_v25  ;;  %v630_v13 = vld [vmem:[#allocation2 + $0x758] sm:$0xff]  ;;  %p1554_p8 = pnand %p1553_p7, %p1549_p2 }
  0x3a   : > { %v587_v30 = vld [vmem:[#allocation2 + $0x600] sm:$0xff]  ;;  %v588_v31 = vld [vmem:[#allocation2 + $0x608] sm:$0xff]  ;;  %700 = vmatpush.msra.mxu1 %v595_v26  ;;  %740 = vmatpush.msra.mxu3 %v596_v27  ;;  %v485_v14 = vld [vmem:[#allocation2 + $0x2d0] sm:$0xff] }
  0x3b   : > { %v451_v32 = vld [vmem:[#allocation2 + $0x1c0] sm:$0xff]  ;;  %v452_v33 = vld [vmem:[#allocation2 + $0x1c8] sm:$0xff]  ;;  %681 = vmatpush.msra.mxu0 %v459_v28  ;;  %721 = vmatpush.msra.mxu2 %v460_v29  ;;  %v621_v15 = vld [vmem:[#allocation2 + $0x710] sm:$0xff] }
  0x3c   : > { %v579_v34 = vld [vmem:[#allocation2 + $0x5c0] sm:$0xff]  ;;  %v580_v35 = vld [vmem:[#allocation2 + $0x5c8] sm:$0xff]  ;;  %701 = vmatpush.msra.mxu1 %v587_v30  ;;  %741 = vmatpush.msra.mxu3 %v588_v31  ;;  %v486_v16 = vld [vmem:[#allocation2 + $0x2d8] sm:$0xff] }
  0x3d   : > { %v443_v36 = vld [vmem:[#allocation2 + $0x180] sm:$0xff]  ;;  %v444_v37 = vld [vmem:[#allocation2 + $0x188] sm:$0xff]  ;;  %682 = vmatpush.msra.mxu0 %v451_v32  ;;  %722 = vmatpush.msra.mxu2 %v452_v33  ;;  %v622_v17 = vld [vmem:[#allocation2 + $0x718] sm:$0xff] }
  0x3e   : > { %v571_v38 = vld [vmem:[#allocation2 + $0x580] sm:$0xff]  ;;  %v572_v39 = vld [vmem:[#allocation2 + $0x588] sm:$0xff]  ;;  %702 = vmatpush.msra.mxu1 %v579_v34  ;;  %742 = vmatpush.msra.mxu3 %v580_v35  ;;  %v477_v18 = vld [vmem:[#allocation2 + $0x290] sm:$0xff] }
  0x3f   : > { %v435_v40 = vld [vmem:[#allocation2 + $0x140] sm:$0xff]  ;;  %v436_v41 = vld [vmem:[#allocation2 + $0x148] sm:$0xff]  ;;  %683 = vmatpush.msra.mxu0 %v443_v36  ;;  %723 = vmatpush.msra.mxu2 %v444_v37  ;;  %v613_v19 = vld [vmem:[#allocation2 + $0x6d0] sm:$0xff] }
  0x40   : > { %v563_v42 = vld [vmem:[#allocation2 + $0x540] sm:$0xff]  ;;  %v564_v43 = vld [vmem:[#allocation2 + $0x548] sm:$0xff]  ;;  %703 = vmatpush.msra.mxu1 %v571_v38  ;;  %743 = vmatpush.msra.mxu3 %v572_v39  ;;  %v478_v20 = vld [vmem:[#allocation2 + $0x298] sm:$0xff] }
  0x41   : > { %v427_v44 = vld [vmem:[#allocation2 + $0x100] sm:$0xff]  ;;  %v428_v45 = vld [vmem:[#allocation2 + $0x108] sm:$0xff]  ;;  %684 = vmatpush.msra.mxu0 %v435_v40  ;;  %724 = vmatpush.msra.mxu2 %v436_v41  ;;  %v614_v21 = vld [vmem:[#allocation2 + $0x6d8] sm:$0xff] }
  0x42   : > { %v555_v46 = vld [vmem:[#allocation2 + $0x500] sm:$0xff]  ;;  %v556_v47 = vld [vmem:[#allocation2 + $0x508] sm:$0xff]  ;;  %704 = vmatpush.msra.mxu1 %v563_v42  ;;  %744 = vmatpush.msra.mxu3 %v564_v43  ;;  %v469_v22 = vld [vmem:[#allocation2 + $0x250] sm:$0xff] }
  0x43   : > { %v419_v48 = vld [vmem:[#allocation2 + $0xc0] sm:$0xff]  ;;  %v420_v49 = vld [vmem:[#allocation2 + $0xc8] sm:$0xff]  ;;  %685 = vmatpush.msra.mxu0 %v427_v44  ;;  %725 = vmatpush.msra.mxu2 %v428_v45  ;;  %v605_v23 = vld [vmem:[#allocation2 + $0x690] sm:$0xff] }
  0x44   : > { %v547_v50 = vld [vmem:[#allocation2 + $0x4c0] sm:$0xff]  ;;  %v548_v51 = vld [vmem:[#allocation2 + $0x4c8] sm:$0xff]  ;;  %705 = vmatpush.msra.mxu1 %v555_v46  ;;  %745 = vmatpush.msra.mxu3 %v556_v47  ;;  %v470_v24 = vld [vmem:[#allocation2 + $0x258] sm:$0xff] }
  0x45   : > { %v411_v52 = vld [vmem:[#allocation2 + $0x80] sm:$0xff]  ;;  %v412_v53 = vld [vmem:[#allocation2 + $0x88] sm:$0xff]  ;;  %686 = vmatpush.msra.mxu0 %v419_v48  ;;  %726 = vmatpush.msra.mxu2 %v420_v49  ;;  %v606_v25 = vld [vmem:[#allocation2 + $0x698] sm:$0xff] }
  0x46   : > { %v539_v54 = vld [vmem:[#allocation2 + $0x480] sm:$0xff]  ;;  %v540_v55 = vld [vmem:[#allocation2 + $0x488] sm:$0xff]  ;;  %706 = vmatpush.msra.mxu1 %v547_v50  ;;  %746 = vmatpush.msra.mxu3 %v548_v51  ;;  %v461_v26 = vld [vmem:[#allocation2 + $0x210] sm:$0xff] }
  0x47   : > { %v403_v56 = vld [vmem:[#allocation2 + $0x40] sm:$0xff]  ;;  %v404_v57 = vld [vmem:[#allocation2 + $0x48] sm:$0xff]  ;;  %687 = vmatpush.msra.mxu0 %v411_v52  ;;  %727 = vmatpush.msra.mxu2 %v412_v53  ;;  %v597_v27 = vld [vmem:[#allocation2 + $0x650] sm:$0xff] }
  0x48   : > { %v531_v58 = vld [vmem:[#allocation2 + $0x440] sm:$0xff]  ;;  %v532_v59 = vld [vmem:[#allocation2 + $0x448] sm:$0xff]  ;;  %707 = vmatpush.msra.mxu1 %v539_v54  ;;  %747 = vmatpush.msra.mxu3 %v540_v55  ;;  %v462_v28 = vld [vmem:[#allocation2 + $0x218] sm:$0xff] }
  0x49   : > { %v395_v60 = vld [vmem:[#allocation2] sm:$0xff]  ;;  %v396_v61 = vld [vmem:[#allocation2 + $0x8] sm:$0xff]  ;;  %688 = vmatpush.msra.mxu0 %v403_v56  ;;  %728 = vmatpush.msra.mxu2 %v404_v57  ;;  %v598_v29 = vld [vmem:[#allocation2 + $0x658] sm:$0xff] }
  0x4a   : > { %708 = vmatpush.msra.mxu1 %v531_v58  ;;  %748 = vmatpush.msra.mxu3 %v532_v59  ;;  %v523_v0 = vld [vmem:[#allocation2 + $0x400] sm:$0xff]  ;;  %v524_v1 = vld [vmem:[#allocation2 + $0x408] sm:$0xff]  ;;  %v453_v30 = vld [vmem:[#allocation2 + $0x1d0] sm:$0xff] }
  0x4b   : > { %689 = vmatpush.msra.mxu0 %v395_v60  ;;  %729 = vmatpush.msra.mxu2 %v396_v61  ;;  %v589_v31 = vld [vmem:[#allocation2 + $0x610] sm:$0xff]  ;;  %v454_v32 = vld [vmem:[#allocation2 + $0x1d8] sm:$0xff]  ;;  %v394_v40 = vld [vmem:[%s393_s18] sm:$0x3] }
  0x4c   : > { %709 = vmatpush.msra.mxu1 %v523_v0  ;;  %749 = vmatpush.msra.mxu3 %v524_v1  ;;  %v590_v33 = vld [vmem:[#allocation2 + $0x618] sm:$0xff]  ;;  %v445_v34 = vld [vmem:[#allocation2 + $0x190] sm:$0xff]  ;;  %v1769_v47 = vperm.slane %v394_v40, 0  ;;  %v1771_v52 = vperm.slane %v394_v40, 1  ;;  %v519_v1 = vld [vmem:[#allocation2 + $0x3e0] sm:$0xff] }
  0x4d   : > { %754 = vmatpush.msrb.mxu0 %v517_v62  ;;  %794 = vmatpush.msrb.mxu2 %v518_v63  ;;  %v581_v35 = vld [vmem:[#allocation2 + $0x5d0] sm:$0xff]  ;;  %v446_v36 = vld [vmem:[#allocation2 + $0x198] sm:$0xff]  ;;  %v584_v40 = vld [vmem:[#allocation2 + $0x5e8] sm:$0xff] }
  0x4e   : > { %774 = vmatpush.msrb.mxu1 %v645_v3  ;;  %814 = vmatpush.msrb.mxu3 %v646_v5  ;;  %v582_v37 = vld [vmem:[#allocation2 + $0x5d8] sm:$0xff]  ;;  %v437_v38 = vld [vmem:[#allocation2 + $0x150] sm:$0xff]  ;;  %v511_v5 = vld [vmem:[#allocation2 + $0x3a0] sm:$0xff] }
  0x4f   : > { %755 = vmatpush.msrb.mxu0 %v509_v2  ;;  %795 = vmatpush.msrb.mxu2 %v510_v4  ;;  %v573_v39 = vld [vmem:[#allocation2 + $0x590] sm:$0xff]  ;;  %v438_v41 = vld [vmem:[#allocation2 + $0x158] sm:$0xff]  ;;  %v520_v2 = vld [vmem:[#allocation2 + $0x3e8] sm:$0xff] }
  0x50   : > { %775 = vmatpush.msrb.mxu1 %v637_v7  ;;  %815 = vmatpush.msrb.mxu3 %v638_v9  ;;  %v574_v42 = vld [vmem:[#allocation2 + $0x598] sm:$0xff]  ;;  %v429_v43 = vld [vmem:[#allocation2 + $0x110] sm:$0xff]  ;;  %v512_v7 = vld [vmem:[#allocation2 + $0x3a8] sm:$0xff] }
  0x51   : > { %756 = vmatpush.msrb.mxu0 %v501_v6  ;;  %796 = vmatpush.msrb.mxu2 %v502_v8  ;;  %v565_v44 = vld [vmem:[#allocation2 + $0x550] sm:$0xff]  ;;  %v430_v45 = vld [vmem:[#allocation2 + $0x118] sm:$0xff]  ;;  %v647_v6 = vld [vmem:[#allocation2 + $0x7e0] sm:$0xff] }
  0x52   : > { %776 = vmatpush.msrb.mxu1 %v629_v11  ;;  %816 = vmatpush.msrb.mxu3 %v630_v13  ;;  %v566_v46 = vld [vmem:[#allocation2 + $0x558] sm:$0xff]  ;;  %v421_v48 = vld [vmem:[#allocation2 + $0xd0] sm:$0xff]  ;;  %v648_v8 = vld [vmem:[#allocation2 + $0x7e8] sm:$0xff] }
  0x53   : > { %757 = vmatpush.msrb.mxu0 %v493_v10  ;;  %797 = vmatpush.msrb.mxu2 %v494_v12  ;;  %v557_v49 = vld [vmem:[#allocation2 + $0x510] sm:$0xff]  ;;  %v422_v50 = vld [vmem:[#allocation2 + $0xd8] sm:$0xff]  ;;  %v503_v9 = vld [vmem:[#allocation2 + $0x360] sm:$0xff] }
  0x54   : > { %777 = vmatpush.msrb.mxu1 %v621_v15  ;;  %817 = vmatpush.msrb.mxu3 %v622_v17  ;;  %v558_v51 = vld [vmem:[#allocation2 + $0x518] sm:$0xff]  ;;  %v413_v53 = vld [vmem:[#allocation2 + $0x90] sm:$0xff]  ;;  %v639_v10 = vld [vmem:[#allocation2 + $0x7a0] sm:$0xff] }
  0x55   : > { %758 = vmatpush.msrb.mxu0 %v485_v14  ;;  %798 = vmatpush.msrb.mxu2 %v486_v16  ;;  %v549_v54 = vld [vmem:[#allocation2 + $0x4d0] sm:$0xff]  ;;  %v414_v55 = vld [vmem:[#allocation2 + $0x98] sm:$0xff]  ;;  %v504_v11 = vld [vmem:[#allocation2 + $0x368] sm:$0xff] }
  0x56   : > { %778 = vmatpush.msrb.mxu1 %v613_v19  ;;  %818 = vmatpush.msrb.mxu3 %v614_v21  ;;  %v550_v56 = vld [vmem:[#allocation2 + $0x4d8] sm:$0xff]  ;;  %v405_v57 = vld [vmem:[#allocation2 + $0x50] sm:$0xff]  ;;  %v640_v12 = vld [vmem:[#allocation2 + $0x7a8] sm:$0xff] }
  0x57   : > { %759 = vmatpush.msrb.mxu0 %v477_v18  ;;  %799 = vmatpush.msrb.mxu2 %v478_v20  ;;  %v541_v58 = vld [vmem:[#allocation2 + $0x490] sm:$0xff]  ;;  %v406_v59 = vld [vmem:[#allocation2 + $0x58] sm:$0xff]  ;;  %v495_v13 = vld [vmem:[#allocation2 + $0x320] sm:$0xff] }
  0x58   : > { %779 = vmatpush.msrb.mxu1 %v605_v23  ;;  %819 = vmatpush.msrb.mxu3 %v606_v25  ;;  %v542_v60 = vld [vmem:[#allocation2 + $0x498] sm:$0xff]  ;;  %v397_v61 = vld [vmem:[#allocation2 + $0x10] sm:$0xff]  ;;  %v631_v14 = vld [vmem:[#allocation2 + $0x760] sm:$0xff] }
  0x59   : > { %760 = vmatpush.msrb.mxu0 %v469_v22  ;;  %800 = vmatpush.msrb.mxu2 %v470_v24  ;;  %v533_v62 = vld [vmem:[#allocation2 + $0x450] sm:$0xff]  ;;  %v398_v63 = vld [vmem:[#allocation2 + $0x18] sm:$0xff]  ;;  %v496_v15 = vld [vmem:[#allocation2 + $0x328] sm:$0xff] }
  0x5a   : > { %780 = vmatpush.msrb.mxu1 %v597_v27  ;;  %820 = vmatpush.msrb.mxu3 %v598_v29  ;;  %v534_v0 = vld [vmem:[#allocation2 + $0x458] sm:$0xff]  ;;  %v525_v3 = vld [vmem:[#allocation2 + $0x410] sm:$0xff]  ;;  %v632_v16 = vld [vmem:[#allocation2 + $0x768] sm:$0xff] }
  0x5b   : > { %761 = vmatpush.msrb.mxu0 %v461_v26  ;;  %801 = vmatpush.msrb.mxu2 %v462_v28  ;;  %v526_v4 = vld [vmem:[#allocation2 + $0x418] sm:$0xff]  ;;  %v487_v17 = vld [vmem:[#allocation2 + $0x2e0] sm:$0xff]  ;;  %v488_v19 = vld [vmem:[#allocation2 + $0x2e8] sm:$0xff] }
  0x5c   : > { %781 = vmatpush.msrb.mxu1 %v589_v31  ;;  %821 = vmatpush.msrb.mxu3 %v590_v33  ;;  %v623_v18 = vld [vmem:[#allocation2 + $0x720] sm:$0xff]  ;;  %v624_v20 = vld [vmem:[#allocation2 + $0x728] sm:$0xff] }
  0x5d   : > { %762 = vmatpush.msrb.mxu0 %v453_v30  ;;  %802 = vmatpush.msrb.mxu2 %v454_v32  ;;  %v479_v21 = vld [vmem:[#allocation2 + $0x2a0] sm:$0xff]  ;;  %v480_v23 = vld [vmem:[#allocation2 + $0x2a8] sm:$0xff] }
  0x5e   : > { %782 = vmatpush.msrb.mxu1 %v581_v35  ;;  %822 = vmatpush.msrb.mxu3 %v582_v37  ;;  %v615_v22 = vld [vmem:[#allocation2 + $0x6e0] sm:$0xff]  ;;  %v616_v24 = vld [vmem:[#allocation2 + $0x6e8] sm:$0xff] }
  0x5f   : > { %763 = vmatpush.msrb.mxu0 %v445_v34  ;;  %803 = vmatpush.msrb.mxu2 %v446_v36  ;;  %v471_v25 = vld [vmem:[#allocation2 + $0x260] sm:$0xff]  ;;  %v472_v27 = vld [vmem:[#allocation2 + $0x268] sm:$0xff] }
  0x60   : > { %783 = vmatpush.msrb.mxu1 %v573_v39  ;;  %823 = vmatpush.msrb.mxu3 %v574_v42  ;;  %v607_v26 = vld [vmem:[#allocation2 + $0x6a0] sm:$0xff]  ;;  %v608_v28 = vld [vmem:[#allocation2 + $0x6a8] sm:$0xff] }
  0x61   : > { %764 = vmatpush.msrb.mxu0 %v437_v38  ;;  %804 = vmatpush.msrb.mxu2 %v438_v41  ;;  %v463_v29 = vld [vmem:[#allocation2 + $0x220] sm:$0xff]  ;;  %v464_v31 = vld [vmem:[#allocation2 + $0x228] sm:$0xff] }
  0x62   : > { %784 = vmatpush.msrb.mxu1 %v565_v44  ;;  %824 = vmatpush.msrb.mxu3 %v566_v46  ;;  %v599_v30 = vld [vmem:[#allocation2 + $0x660] sm:$0xff]  ;;  %v600_v32 = vld [vmem:[#allocation2 + $0x668] sm:$0xff] }
  0x63   : > { %765 = vmatpush.msrb.mxu0 %v429_v43  ;;  %805 = vmatpush.msrb.mxu2 %v430_v45  ;;  %v455_v33 = vld [vmem:[#allocation2 + $0x1e0] sm:$0xff]  ;;  %v456_v35 = vld [vmem:[#allocation2 + $0x1e8] sm:$0xff] }
  0x64   : > { %730 = vmatmul.f32.vlgmr.msra.gmra.mxu2 %v1769_v47  ;;  %785 = vmatpush.msrb.mxu1 %v557_v49  ;;  %v591_v34 = vld [vmem:[#allocation2 + $0x620] sm:$0xff]  ;;  %v592_v36 = vld [vmem:[#allocation2 + $0x628] sm:$0xff] }
  0x65   : > { %766 = vmatpush.msrb.mxu0 %v421_v48  ;;  %806 = vmatpush.msrb.mxu2 %v422_v50  ;;  %v447_v37 = vld [vmem:[#allocation2 + $0x1a0] sm:$0xff]  ;;  %v448_v39 = vld [vmem:[#allocation2 + $0x1a8] sm:$0xff] }
  0x66   : > { %825 = vmatpush.msrb.mxu3 %v558_v51  ;;  %690 = vmatmul.f32.vlgmr.msra.gmra.mxu0 %v1769_v47  ;;  %v583_v38 = vld [vmem:[#allocation2 + $0x5e0] sm:$0xff]  ;;  %v440_v43 = vld [vmem:[#allocation2 + $0x168] sm:$0xff] }
  0x67   : > { %750 = vmatmul.f32.vlgmr.msra.gmra.mxu3 %v1771_v52  ;;  %767 = vmatpush.msrb.mxu0 %v413_v53  ;;  %v439_v41 = vld [vmem:[#allocation2 + $0x160] sm:$0xff]  ;;  %v576_v44 = vld [vmem:[#allocation2 + $0x5a8] sm:$0xff] }
  0x68   : > { %786 = vmatpush.msrb.mxu1 %v549_v54  ;;  %807 = vmatpush.msrb.mxu2 %v414_v55  ;;  %v575_v42 = vld [vmem:[#allocation2 + $0x5a0] sm:$0xff]  ;;  %v432_v48 = vld [vmem:[#allocation2 + $0x128] sm:$0xff] }
  0x69   : > { %826 = vmatpush.msrb.mxu3 %v550_v56  ;;  %710 = vmatmul.f32.vlgmr.msra.gmra.mxu1 %v1771_v52  ;;  %v431_v45 = vld [vmem:[#allocation2 + $0x120] sm:$0xff]  ;;  %v568_v49 = vld [vmem:[#allocation2 + $0x568] sm:$0xff] }
  0x6a   : > { %768 = vmatpush.msrb.mxu0 %v405_v57  ;;  %787 = vmatpush.msrb.mxu1 %v541_v58  ;;  %v567_v46 = vld [vmem:[#allocation2 + $0x560] sm:$0xff]  ;;  %v424_v53 = vld [vmem:[#allocation2 + $0xe8] sm:$0xff] }
  0x6b   : > { %808 = vmatpush.msrb.mxu2 %v406_v59  ;;  %827 = vmatpush.msrb.mxu3 %v542_v60  ;;  %v423_v50 = vld [vmem:[#allocation2 + $0xe0] sm:$0xff]  ;;  %v560_v54 = vld [vmem:[#allocation2 + $0x528] sm:$0xff] }
  0x6c   : > { %769 = vmatpush.msrb.mxu0 %v397_v61  ;;  %788 = vmatpush.msrb.mxu1 %v533_v62  ;;  %v559_v51 = vld [vmem:[#allocation2 + $0x520] sm:$0xff]  ;;  %v416_v57 = vld [vmem:[#allocation2 + $0xa8] sm:$0xff] }
  0x6d   : > { %809 = vmatpush.msrb.mxu2 %v398_v63  ;;  %828 = vmatpush.msrb.mxu3 %v534_v0  ;;  %v415_v55 = vld [vmem:[#allocation2 + $0xa0] sm:$0xff]  ;;  %v552_v58 = vld [vmem:[#allocation2 + $0x4e8] sm:$0xff] }
  0x6e   : > { %810 = vmatmul.f32.vlgmr.msrb.gmra.mxu2 %v1769_v47  ;;  %834 = vmatpush.msra.mxu0 %v519_v1  ;;  %v551_v56 = vld [vmem:[#allocation2 + $0x4e0] sm:$0xff]  ;;  %v408_v61 = vld [vmem:[#allocation2 + $0x68] sm:$0xff] }
  0x6f   : > { %874 = vmatpush.msra.mxu2 %v520_v2  ;;  %789 = vmatpush.msrb.mxu1 %v525_v3  ;;  %v407_v59 = vld [vmem:[#allocation2 + $0x60] sm:$0xff]  ;;  %v544_v62 = vld [vmem:[#allocation2 + $0x4a8] sm:$0xff]  ;;  %v521_v3 = vld [vmem:[#allocation2 + $0x3f0] sm:$0xff] }
  0x70   : > { %829 = vmatpush.msrb.mxu3 %v526_v4  ;;  %770 = vmatmul.f32.vlgmr.msrb.gmra.mxu0 %v1769_v47  ;;  %v543_v60 = vld [vmem:[#allocation2 + $0x4a0] sm:$0xff]  ;;  %v400_v1 = vld [vmem:[#allocation2 + $0x28] sm:$0xff]  ;;  %v522_v4 = vld [vmem:[#allocation2 + $0x3f8] sm:$0xff] }
  0x71   : > { %830 = vmatmul.f32.vlgmr.msrb.gmra.mxu3 %v1771_v52  ;;  %835 = vmatpush.msra.mxu0 %v511_v5  ;;  %v399_v63 = vld [vmem:[#allocation2 + $0x20] sm:$0xff]  ;;  %v536_v2 = vld [vmem:[#allocation2 + $0x468] sm:$0xff] }
  0x72   : > { %854 = vmatpush.msra.mxu1 %v647_v6  ;;  %875 = vmatpush.msra.mxu2 %v512_v7  ;;  %v535_v0 = vld [vmem:[#allocation2 + $0x460] sm:$0xff]  ;;  %v528_v6 = vld [vmem:[#allocation2 + $0x428] sm:$0xff]  ;;  %v513_v7 = vld [vmem:[#allocation2 + $0x3b0] sm:$0xff] }
  0x73   : > { %894 = vmatpush.msra.mxu3 %v648_v8  ;;  %790 = vmatmul.f32.vlgmr.msrb.gmra.mxu1 %v1771_v52  ;;  %v527_v5 = vld [vmem:[#allocation2 + $0x420] sm:$0xff]  ;;  %v649_v8 = vld [vmem:[#allocation2 + $0x7f0] sm:$0xff] }
  0x74   : > { %836 = vmatpush.msra.mxu0 %v503_v9  ;;  %855 = vmatpush.msra.mxu1 %v639_v10  ;;  %v514_v9 = vld [vmem:[#allocation2 + $0x3b8] sm:$0xff] }
  0x75   : > { %876 = vmatpush.msra.mxu2 %v504_v11  ;;  %895 = vmatpush.msra.mxu3 %v640_v12  ;;  %v650_v10 = vld [vmem:[#allocation2 + $0x7f8] sm:$0xff]  ;;  %v505_v11 = vld [vmem:[#allocation2 + $0x370] sm:$0xff] }
  0x76   : > { %837 = vmatpush.msra.mxu0 %v495_v13  ;;  %856 = vmatpush.msra.mxu1 %v631_v14  ;;  %v641_v12 = vld [vmem:[#allocation2 + $0x7b0] sm:$0xff]  ;;  %v506_v13 = vld [vmem:[#allocation2 + $0x378] sm:$0xff] }
  0x77   : > { %877 = vmatpush.msra.mxu2 %v496_v15  ;;  %896 = vmatpush.msra.mxu3 %v632_v16  ;;  %v642_v14 = vld [vmem:[#allocation2 + $0x7b8] sm:$0xff]  ;;  %v497_v15 = vld [vmem:[#allocation2 + $0x330] sm:$0xff] }
  0x78   : > { %838 = vmatpush.msra.mxu0 %v487_v17  ;;  %857 = vmatpush.msra.mxu1 %v623_v18  ;;  %v633_v16 = vld [vmem:[#allocation2 + $0x770] sm:$0xff]  ;;  %v498_v17 = vld [vmem:[#allocation2 + $0x338] sm:$0xff] }
  0x79   : > { %878 = vmatpush.msra.mxu2 %v488_v19  ;;  %897 = vmatpush.msra.mxu3 %v624_v20  ;;  %v634_v18 = vld [vmem:[#allocation2 + $0x778] sm:$0xff]  ;;  %v489_v19 = vld [vmem:[#allocation2 + $0x2f0] sm:$0xff] }
  0x7a   : > { %839 = vmatpush.msra.mxu0 %v479_v21  ;;  %858 = vmatpush.msra.mxu1 %v615_v22  ;;  %v625_v20 = vld [vmem:[#allocation2 + $0x730] sm:$0xff]  ;;  %v490_v21 = vld [vmem:[#allocation2 + $0x2f8] sm:$0xff] }
  0x7b   : > { %879 = vmatpush.msra.mxu2 %v480_v23  ;;  %898 = vmatpush.msra.mxu3 %v616_v24  ;;  %v626_v22 = vld [vmem:[#allocation2 + $0x738] sm:$0xff]  ;;  %v481_v23 = vld [vmem:[#allocation2 + $0x2b0] sm:$0xff] }
  0x7c   : > { %840 = vmatpush.msra.mxu0 %v471_v25  ;;  %859 = vmatpush.msra.mxu1 %v607_v26  ;;  %v617_v24 = vld [vmem:[#allocation2 + $0x6f0] sm:$0xff]  ;;  %v482_v25 = vld [vmem:[#allocation2 + $0x2b8] sm:$0xff] }
  0x7d   : > { %880 = vmatpush.msra.mxu2 %v472_v27  ;;  %899 = vmatpush.msra.mxu3 %v608_v28  ;;  %v618_v26 = vld [vmem:[#allocation2 + $0x6f8] sm:$0xff]  ;;  %v473_v27 = vld [vmem:[#allocation2 + $0x270] sm:$0xff] }
  0x7e   : > { %841 = vmatpush.msra.mxu0 %v463_v29  ;;  %860 = vmatpush.msra.mxu1 %v599_v30  ;;  %v609_v28 = vld [vmem:[#allocation2 + $0x6b0] sm:$0xff]  ;;  %v474_v29 = vld [vmem:[#allocation2 + $0x278] sm:$0xff] }
  0x7f   : > { %881 = vmatpush.msra.mxu2 %v464_v31  ;;  %900 = vmatpush.msra.mxu3 %v600_v32  ;;  %v610_v30 = vld [vmem:[#allocation2 + $0x6b8] sm:$0xff]  ;;  %v465_v31 = vld [vmem:[#allocation2 + $0x230] sm:$0xff] }
  0x80   : > { %842 = vmatpush.msra.mxu0 %v455_v33  ;;  %861 = vmatpush.msra.mxu1 %v591_v34  ;;  %v601_v32 = vld [vmem:[#allocation2 + $0x670] sm:$0xff]  ;;  %v466_v33 = vld [vmem:[#allocation2 + $0x238] sm:$0xff] }
  0x81   : > { %882 = vmatpush.msra.mxu2 %v456_v35  ;;  %901 = vmatpush.msra.mxu3 %v592_v36  ;;  %v602_v34 = vld [vmem:[#allocation2 + $0x678] sm:$0xff]  ;;  %v457_v35 = vld [vmem:[#allocation2 + $0x1f0] sm:$0xff] }
  0x82   : > { %843 = vmatpush.msra.mxu0 %v447_v37  ;;  %862 = vmatpush.msra.mxu1 %v583_v38  ;;  %v593_v36 = vld [vmem:[#allocation2 + $0x630] sm:$0xff]  ;;  %v458_v37 = vld [vmem:[#allocation2 + $0x1f8] sm:$0xff] }
  0x83   : > { %883 = vmatpush.msra.mxu2 %v448_v39  ;;  %902 = vmatpush.msra.mxu3 %v584_v40  ;;  %v594_v38 = vld [vmem:[#allocation2 + $0x638] sm:$0xff]  ;;  %v449_v39 = vld [vmem:[#allocation2 + $0x1b0] sm:$0xff] }
  0x84   : > { %844 = vmatpush.msra.mxu0 %v439_v41  ;;  %863 = vmatpush.msra.mxu1 %v575_v42  ;;  %v585_v40 = vld [vmem:[#allocation2 + $0x5f0] sm:$0xff]  ;;  %v450_v41 = vld [vmem:[#allocation2 + $0x1b8] sm:$0xff] }
  0x85   : > { %884 = vmatpush.msra.mxu2 %v440_v43  ;;  %903 = vmatpush.msra.mxu3 %v576_v44  ;;  %v586_v42 = vld [vmem:[#allocation2 + $0x5f8] sm:$0xff]  ;;  %v441_v43 = vld [vmem:[#allocation2 + $0x170] sm:$0xff] }
  0x86   : > { %845 = vmatpush.msra.mxu0 %v431_v45  ;;  %864 = vmatpush.msra.mxu1 %v567_v46  ;;  %v577_v44 = vld [vmem:[#allocation2 + $0x5b0] sm:$0xff]  ;;  %v442_v45 = vld [vmem:[#allocation2 + $0x178] sm:$0xff] }
  0x87   : > { %885 = vmatpush.msra.mxu2 %v432_v48  ;;  %904 = vmatpush.msra.mxu3 %v568_v49  ;;  %v578_v46 = vld [vmem:[#allocation2 + $0x5b8] sm:$0xff]  ;;  %v433_v48 = vld [vmem:[#allocation2 + $0x130] sm:$0xff] }
  0x88   : > { %846 = vmatpush.msra.mxu0 %v423_v50  ;;  %865 = vmatpush.msra.mxu1 %v559_v51  ;;  %v569_v49 = vld [vmem:[#allocation2 + $0x570] sm:$0xff]  ;;  %v434_v50 = vld [vmem:[#allocation2 + $0x138] sm:$0xff] }
  0x89   : > { %886 = vmatpush.msra.mxu2 %v424_v53  ;;  %905 = vmatpush.msra.mxu3 %v560_v54  ;;  %v570_v51 = vld [vmem:[#allocation2 + $0x578] sm:$0xff]  ;;  %v425_v53 = vld [vmem:[#allocation2 + $0xf0] sm:$0xff] }
  0x8a   : > { %847 = vmatpush.msra.mxu0 %v415_v55  ;;  %866 = vmatpush.msra.mxu1 %v551_v56  ;;  %v561_v54 = vld [vmem:[#allocation2 + $0x530] sm:$0xff]  ;;  %v426_v55 = vld [vmem:[#allocation2 + $0xf8] sm:$0xff] }
  0x8b   : > { %887 = vmatpush.msra.mxu2 %v416_v57  ;;  %906 = vmatpush.msra.mxu3 %v552_v58  ;;  %v562_v56 = vld [vmem:[#allocation2 + $0x538] sm:$0xff]  ;;  %v417_v57 = vld [vmem:[#allocation2 + $0xb0] sm:$0xff] }
  0x8c   : > { %848 = vmatpush.msra.mxu0 %v407_v59  ;;  %867 = vmatpush.msra.mxu1 %v543_v60  ;;  %v553_v58 = vld [vmem:[#allocation2 + $0x4f0] sm:$0xff]  ;;  %v418_v59 = vld [vmem:[#allocation2 + $0xb8] sm:$0xff] }
  0x8d   : > { %888 = vmatpush.msra.mxu2 %v408_v61  ;;  %907 = vmatpush.msra.mxu3 %v544_v62  ;;  %v554_v60 = vld [vmem:[#allocation2 + $0x4f8] sm:$0xff]  ;;  %v409_v61 = vld [vmem:[#allocation2 + $0x70] sm:$0xff] }
  0x8e   : > { %849 = vmatpush.msra.mxu0 %v399_v63  ;;  %868 = vmatpush.msra.mxu1 %v535_v0  ;;  %v545_v62 = vld [vmem:[#allocation2 + $0x4b0] sm:$0xff]  ;;  %v410_v63 = vld [vmem:[#allocation2 + $0x78] sm:$0xff] }
  0x8f   : > { %889 = vmatpush.msra.mxu2 %v400_v1  ;;  %908 = vmatpush.msra.mxu3 %v536_v2  ;;  %v546_v0 = vld [vmem:[#allocation2 + $0x4b8] sm:$0xff]  ;;  %v401_v1 = vld [vmem:[#allocation2 + $0x30] sm:$0xff] }
  0x90   : > { %914 = vmatpush.msrb.mxu0 %v521_v3  ;;  %869 = vmatpush.msra.mxu1 %v527_v5  ;;  %v537_v2 = vld [vmem:[#allocation2 + $0x470] sm:$0xff]  ;;  %v402_v3 = vld [vmem:[#allocation2 + $0x38] sm:$0xff] }
  0x91   : > { %954 = vmatpush.msrb.mxu2 %v522_v4  ;;  %909 = vmatpush.msra.mxu3 %v528_v6  ;;  %v538_v4 = vld [vmem:[#allocation2 + $0x478] sm:$0xff]  ;;  %v529_v5 = vld [vmem:[#allocation2 + $0x430] sm:$0xff] }
  0x92   : > { %915 = vmatpush.msrb.mxu0 %v513_v7  ;;  %934 = vmatpush.msrb.mxu1 %v649_v8  ;;  %v530_v6 = vld [vmem:[#allocation2 + $0x438] sm:$0xff]  ;;  %v1038_v8 = vld [vmem:[#allocation5 + $0x70] sm:$0xff] }
  0x93   : > { %955 = vmatpush.msrb.mxu2 %v514_v9  ;;  %974 = vmatpush.msrb.mxu3 %v650_v10  ;;  %v1039_v7 = vld [vmem:[#allocation5 + $0x78] sm:$0xff]  ;;  %v1037_v10 = vld [vmem:[#allocation5 + $0x68] sm:$0xff] }
  0x94   : > { %916 = vmatpush.msrb.mxu0 %v505_v11  ;;  %935 = vmatpush.msrb.mxu1 %v641_v12  ;;  %v1055_v9 = vld [vmem:[#allocation5 + $0xf8] sm:$0xff]  ;;  %v1054_v11 = vld [vmem:[#allocation5 + $0xf0] sm:$0xff]  ;;  %v1053_v12 = vld [vmem:[#allocation5 + $0xe8] sm:$0xff] }
  0x95   : > { %956 = vmatpush.msrb.mxu2 %v506_v13  ;;  %975 = vmatpush.msrb.mxu3 %v642_v14  ;;  %v1036_v13 = vld [vmem:[#allocation5 + $0x60] sm:$0xff]  ;;  %v1035_v14 = vld [vmem:[#allocation5 + $0x58] sm:$0xff] }
  0x96   : > { %917 = vmatpush.msrb.mxu0 %v497_v15  ;;  %936 = vmatpush.msrb.mxu1 %v633_v16  ;;  %v1033_v15 = vld [vmem:[#allocation5 + $0x48] sm:$0xff]  ;;  %v1032_v16 = vld [vmem:[#allocation5 + $0x40] sm:$0xff] }
  0x97   : > { %957 = vmatpush.msrb.mxu2 %v498_v17  ;;  %976 = vmatpush.msrb.mxu3 %v634_v18  ;;  %v1051_v17 = vld [vmem:[#allocation5 + $0xd8] sm:$0xff] }
  0x98   : > { %918 = vmatpush.msrb.mxu0 %v489_v19  ;;  %937 = vmatpush.msrb.mxu1 %v625_v20  ;;  %v1031_v18 = vld [vmem:[#allocation5 + $0x38] sm:$0xff]  ;;  %v1050_v19 = vld [vmem:[#allocation5 + $0xd0] sm:$0xff] }
  0x99   : > { %958 = vmatpush.msrb.mxu2 %v490_v21  ;;  %977 = vmatpush.msrb.mxu3 %v626_v22  ;;  %v1030_v20 = vld [vmem:[#allocation5 + $0x30] sm:$0xff]  ;;  %v1049_v21 = vld [vmem:[#allocation5 + $0xc8] sm:$0xff] }
  0x9a   : > { %919 = vmatpush.msrb.mxu0 %v481_v23  ;;  %938 = vmatpush.msrb.mxu1 %v617_v24  ;;  %v1029_v22 = vld [vmem:[#allocation5 + $0x28] sm:$0xff]  ;;  %v1048_v23 = vld [vmem:[#allocation5 + $0xc0] sm:$0xff] }
  0x9b   : > { %959 = vmatpush.msrb.mxu2 %v482_v25  ;;  %978 = vmatpush.msrb.mxu3 %v618_v26  ;;  %v1028_v24 = vld [vmem:[#allocation5 + $0x20] sm:$0xff]  ;;  %v1047_v25 = vld [vmem:[#allocation5 + $0xb8] sm:$0xff] }
  0x9c   : > { %920 = vmatpush.msrb.mxu0 %v473_v27  ;;  %939 = vmatpush.msrb.mxu1 %v609_v28  ;;  %v1027_v27 = vld [vmem:[#allocation5 + $0x18] sm:$0xff]  ;;  %v1046_v28 = vld [vmem:[#allocation5 + $0xb0] sm:$0xff] }
  0x9d   : > { %960 = vmatpush.msrb.mxu2 %v474_v29  ;;  %979 = vmatpush.msrb.mxu3 %v610_v30  ;;  %v1026_v29 = vld [vmem:[#allocation5 + $0x10] sm:$0xff]  ;;  %v1045_v30 = vld [vmem:[#allocation5 + $0xa8] sm:$0xff] }
  0x9e   : > { %921 = vmatpush.msrb.mxu0 %v465_v31  ;;  %940 = vmatpush.msrb.mxu1 %v601_v32  ;;  %v1025_v32 = vld [vmem:[#allocation5 + $0x8] sm:$0xff] }
  0x9f   : > { %961 = vmatpush.msrb.mxu2 %v466_v33  ;;  %980 = vmatpush.msrb.mxu3 %v602_v34  ;;  %v1044_v33 = vld [vmem:[#allocation5 + $0xa0] sm:$0xff] }
  0xa0   : > { %922 = vmatpush.msrb.mxu0 %v457_v35  ;;  %941 = vmatpush.msrb.mxu1 %v593_v36  ;;  %v1024_v34 = vld [vmem:[#allocation5] sm:$0xff]  ;;  %v1043_v35 = vld [vmem:[#allocation5 + $0x98] sm:$0xff] }
  0xa1   : > { %962 = vmatpush.msrb.mxu2 %v458_v37  ;;  %981 = vmatpush.msrb.mxu3 %v594_v38  ;;  %v1042_v37 = vld [vmem:[#allocation5 + $0x90] sm:$0xff] }
  0xa2   : > { %923 = vmatpush.msrb.mxu0 %v449_v39  ;;  %942 = vmatpush.msrb.mxu1 %v585_v40  ;;  %v1041_v40 = vld [vmem:[#allocation5 + $0x88] sm:$0xff] }
  0xa3   : > { %963 = vmatpush.msrb.mxu2 %v450_v41  ;;  %982 = vmatpush.msrb.mxu3 %v586_v42  ;;  %v1040_v41 = vld [vmem:[#allocation5 + $0x80] sm:$0xff] }
  0xa4   : > { %924 = vmatpush.msrb.mxu0 %v441_v43  ;;  %943 = vmatpush.msrb.mxu1 %v577_v44  ;;  %v1792_v42 = vld [vmem:[%s1845_s2] sm:$0xff]  ;;  %v1115_v44 = vld [vmem:[#allocation7 + $0x78] sm:$0xff] }
  0xa5   : > { %964 = vmatpush.msrb.mxu2 %v442_v45  ;;  %983 = vmatpush.msrb.mxu3 %v578_v46  ;;  %v1114_v45 = vld [vmem:[#allocation7 + $0x70] sm:$0xff]  ;;  %v658_v46 = vperm.slane %v1792_v42, 0 }
  0xa6   : > { %890 = vmatmul.f32.vlgmr.msra.gmra.mxu2 %v1769_v47  ;;  %925 = vmatpush.msrb.mxu0 %v433_v48  ;;  %v1113_v48 = vld [vmem:[#allocation7 + $0x68] sm:$0xff] }
  0xa7   : > { %944 = vmatpush.msrb.mxu1 %v569_v49  ;;  %965 = vmatpush.msrb.mxu2 %v434_v50  ;;  %v660_v49 = vperm.slane %v1792_v42, 2 }
  0xa8   : > { %984 = vmatpush.msrb.mxu3 %v570_v51  ;;  %850 = vmatmul.f32.vlgmr.msra.gmra.mxu0 %v1769_v47 }
  0xa9   : > { %910 = vmatmul.f32.vlgmr.msra.gmra.mxu3 %v1771_v52  ;;  %926 = vmatpush.msrb.mxu0 %v425_v53  ;;  %v1112_v53 = vld [vmem:[#allocation7 + $0x60] sm:$0xff] }
  0xaa   : > { %945 = vmatpush.msrb.mxu1 %v561_v54  ;;  %966 = vmatpush.msrb.mxu2 %v426_v55  ;;  %v662_v54 = vperm.slane %v1792_v42, 4 }
  0xab   : > { %985 = vmatpush.msrb.mxu3 %v562_v56  ;;  %870 = vmatmul.f32.vlgmr.msra.gmra.mxu1 %v1771_v52 }
  0xac   : > { %927 = vmatpush.msrb.mxu0 %v417_v57  ;;  %946 = vmatpush.msrb.mxu1 %v553_v58  ;;  %v1111_v57 = vld [vmem:[#allocation7 + $0x58] sm:$0xff] }
  0xad   : > { %967 = vmatpush.msrb.mxu2 %v418_v59  ;;  %986 = vmatpush.msrb.mxu3 %v554_v60  ;;  %v1110_v60 = vld [vmem:[#allocation7 + $0x50] sm:$0xff] }
  0xae   : > { %928 = vmatpush.msrb.mxu0 %v409_v61  ;;  %947 = vmatpush.msrb.mxu1 %v545_v62  ;;  %v661_v61 = vperm.slane %v1792_v42, 3 }
  0xaf   : > { %968 = vmatpush.msrb.mxu2 %v410_v63  ;;  %987 = vmatpush.msrb.mxu3 %v546_v0  ;;  %v659_v0 = vperm.slane %v1792_v42, 1 }
  0xb0   : > { %929 = vmatpush.msrb.mxu0 %v401_v1  ;;  %948 = vmatpush.msrb.mxu1 %v537_v2  ;;  %v1109_v1 = vld [vmem:[#allocation7 + $0x48] sm:$0xff] }
  0xb1   : > { %969 = vmatpush.msrb.mxu2 %v402_v3  ;;  %988 = vmatpush.msrb.mxu3 %v538_v4  ;;  %v663_v3 = vperm.slane %v1792_v42, 5  ;;  %v664_v4 = vperm.slane %v1792_v42, 6 }
  0xb2   : > { %930 = vmatmul.f32.vlgmr.msrb.gmra.mxu0 %v1769_v47  ;;  %970 = vmatmul.f32.vlgmr.msrb.gmra.mxu2 %v1769_v47  ;;  %v1034_v47 = vld [vmem:[#allocation5 + $0x50] sm:$0xff] }
  0xb3   : > { %949 = vmatpush.msrb.mxu1 %v529_v5  ;;  %989 = vmatpush.msrb.mxu3 %v530_v6  ;;  %v1108_v6 = vld [vmem:[#allocation7 + $0x40] sm:$0xff] }
  0xb4   : > { %950 = vmatmul.f32.vlgmr.msrb.gmra.mxu1 %v1771_v52  ;;  %990 = vmatmul.f32.vlgmr.msrb.gmra.mxu3 %v1771_v52  ;;  %v1052_v52 = vld [vmem:[#allocation5 + $0xe0] sm:$0xff] }
  0xb5   : > { %1057 = vmatpush.msra.mxu0 %v1039_v7  ;;  %1077 = vmatpush.msra.mxu1 %v1055_v9 }
  0xb6   : > { %1117 = vmatpush.msra.mxu2 %v1115_v44 }
  0xb7   : > { %1058 = vmatpush.msra.mxu0 %v1038_v8  ;;  %1078 = vmatpush.msra.mxu1 %v1054_v11 }
  0xb8   : > { %1118 = vmatpush.msra.mxu2 %v1114_v45 }
  0xb9   : > { %1059 = vmatpush.msra.mxu0 %v1037_v10  ;;  %1079 = vmatpush.msra.mxu1 %v1053_v12 }
  0xba   : > { %1119 = vmatpush.msra.mxu2 %v1113_v48  ;;  %v1104_v48 = vld [vmem:[#allocation7 + $0x20] sm:$0xff] }
  0xbb   : > { %1060 = vmatpush.msra.mxu0 %v1036_v13  ;;  %1080 = vmatpush.msra.mxu1 %v1052_v52  ;;  %v1107_v13 = vld [vmem:[#allocation7 + $0x38] sm:$0xff] }
  0xbc   : > { %1120 = vmatpush.msra.mxu2 %v1112_v53  ;;  %v1100_v53 = vld [vmem:[#allocation7] sm:$0xff] }
  0xbd   : > { %1061 = vmatpush.msra.mxu0 %v1035_v14  ;;  %1081 = vmatpush.msra.mxu1 %v1051_v17 }
  0xbe   : > { %1121 = vmatpush.msra.mxu2 %v1111_v57  ;;  %v1152_v57 = vld [vmem:[#allocation8 + $0x60] sm:$0xff] }
  0xbf   : > { %1062 = vmatpush.msra.mxu0 %v1034_v47  ;;  %1082 = vmatpush.msra.mxu1 %v1050_v19 }
  0xc0   : > { %1122 = vmatpush.msra.mxu2 %v1110_v60  ;;  %v1149_v60 = vld [vmem:[#allocation8 + $0x48] sm:$0xff] }
  0xc1   : > { %1063 = vmatpush.msra.mxu0 %v1033_v15  ;;  %1083 = vmatpush.msra.mxu1 %v1049_v21 }
  0xc2   : > { %1123 = vmatpush.msra.mxu2 %v1109_v1  ;;  %v1144_v1 = vld [vmem:[#allocation8 + $0x20] sm:$0xff] }
  0xc3   : > { %1064 = vmatpush.msra.mxu0 %v1032_v16  ;;  %1084 = vmatpush.msra.mxu1 %v1048_v23  ;;  %v1106_v16 = vld [vmem:[#allocation7 + $0x30] sm:$0xff] }
  0xc4   : > { %1124 = vmatpush.msra.mxu2 %v1108_v6 }
  0xc5   : > { %1065 = vmatpush.msra.mxu0 %v1031_v18  ;;  %1085 = vmatpush.msra.mxu1 %v1047_v25 }
  0xc6   : > { %1125 = vmatpush.msra.mxu2 %v1107_v13  ;;  %v1116_v13 = vld [vmem:[%s1849_s6] sm:$0x1] }
  0xc7   : > { %1066 = vmatpush.msra.mxu0 %v1030_v20  ;;  %1086 = vmatpush.msra.mxu1 %v1046_v28  ;;  %v665_v20 = vperm.slane %v1792_v42, 7 }
  0xc8   : > { %1126 = vmatpush.msra.mxu2 %v1106_v16  ;;  %v1156_v16 = vld [vmem:[%s1851_s8] sm:$0x1] }
  0xc9   : > { %1067 = vmatpush.msra.mxu0 %v1029_v22  ;;  %1087 = vmatpush.msra.mxu1 %v1045_v30 }
  0xcb   : > { %1068 = vmatpush.msra.mxu0 %v1028_v24  ;;  %1088 = vmatpush.msra.mxu1 %v1044_v33 }
  0xcd   : > { %1069 = vmatpush.msra.mxu0 %v1027_v27  ;;  %1089 = vmatpush.msra.mxu1 %v1043_v35 }
  0xcf   : > { %1070 = vmatpush.msra.mxu0 %v1026_v29  ;;  %1090 = vmatpush.msra.mxu1 %v1042_v37 }
  0xd1   : > { %1071 = vmatpush.msra.mxu0 %v1025_v32  ;;  %1091 = vmatpush.msra.mxu1 %v1041_v40 }
  0xd3   : > { %1072 = vmatpush.msra.mxu0 %v1024_v34  ;;  %1092 = vmatpush.msra.mxu1 %v1040_v41 }
  0xe3   : > { %v691_v26 = vpop.f32.mrf.mxu0 }
  0xe4   : > { %v692_v55 = vadd.f32 %v691_v26, %v658_v46  ;;  %v1105_v46 = vld [vmem:[#allocation7 + $0x28] sm:$0xff] }
  0xe5   : > { %1127 = vmatpush.msra.mxu2 %v1105_v46 }
  0xe6   : > { %v711_v31 = vpop.f32.mrf.mxu1 }
  0xe7   : > { %v731_v36 = vpop.f32.mrf.mxu2  ;;  %v712_v63 = vadd.f32 %v711_v31, %v692_v55  ;;  %1128 = vmatpush.msra.mxu2 %v1104_v48  ;;  %v1154_v55 = vld [vmem:[#allocation8 + $0x70] sm:$0xff] }
  0xe8   : > { %v732_v10 = vadd.f32 %v731_v36, %v659_v0  ;;  %v1145_v0 = vld [vmem:[#allocation8 + $0x28] sm:$0xff] }
  0xe9   : > { %v1002_v9 = vmul.f32 0.01, %v712_v63  ;;  %vm994_vm0 = vcmp.gt.f32.partialorder %v712_v63, 0.0 }
  0xea   : > { %v751_v38 = vpop.f32.mrf.mxu3 }
  0xeb   : > { %v1010_v21 = vsel %vm994_vm0, %v712_v63, %v1002_v9  ;;  %v752_v22 = vadd.f32 %v751_v38, %v732_v10  ;;  %v1146_v63 = vld [vmem:[#allocation8 + $0x30] sm:$0xff] }
  0xec   : > { %v1142_v10 = vld [vmem:[#allocation8 + $0x10] sm:$0xff] }
  0xed   : > { %v771_v39 = vpop.f32.mrf.mxu0  ;;  %v1003_v34 = vmul.f32 0.01, %v752_v22  ;;  %vm995_vm5 = vcmp.gt.f32.partialorder %v752_v22, 0.0 }
  0xee   : > { %v772_v58 = vadd.f32 %v771_v39, %v660_v49  ;;  %v1103_v49 = vld [vmem:[#allocation7 + $0x18] sm:$0xff] }
  0xef   : > { %v1011_v40 = vsel %vm995_vm5, %v752_v22, %v1003_v34  ;;  %1129 = vmatpush.msra.mxu2 %v1103_v49 }
  0xf0   : > { %v791_v43 = vpop.f32.mrf.mxu1 }
  0xf1   : > { %v811_v50 = vpop.f32.mrf.mxu2  ;;  %v792_v2 = vadd.f32 %v791_v43, %v772_v58  ;;  %v1151_v58 = vld [vmem:[#allocation8 + $0x58] sm:$0xff] }
  0xf2   : > { %v812_v7 = vadd.f32 %v811_v50, %v661_v61  ;;  %v1102_v50 = vld [vmem:[#allocation7 + $0x10] sm:$0xff]  ;;  %v1148_v61 = vld [vmem:[#allocation8 + $0x40] sm:$0xff] }
  0xf3   : > { %v1004_v14 = vmul.f32 0.01, %v792_v2  ;;  %vm996_vm1 = vcmp.gt.f32.partialorder %v792_v2, 0.0  ;;  %1130 = vmatpush.msra.mxu2 %v1102_v50 }
  0xf4   : > { %v831_v56 = vpop.f32.mrf.mxu3 }
  0xf5   : > { %v832_v17 = vadd.f32 %v831_v56, %v812_v7  ;;  %v1012_v23 = vsel %vm996_vm1, %v792_v2, %v1004_v14  ;;  %v1153_v56 = vld [vmem:[#allocation8 + $0x68] sm:$0xff]  ;;  %v1056_v2 = vld [vmem:[%s1847_s4] sm:$0x1] }
  0xf6   : > { %v1018_v31 = vmax.f32 %v1010_v21, %v1012_v23 }
  0xf7   : > { %v1005_v27 = vmul.f32 0.01, %v832_v17  ;;  %vm997_vm4 = vcmp.gt.f32.partialorder %v832_v17, 0.0 }
  0xf9   : > { %v1013_v38 = vsel %vm997_vm4, %v832_v17, %v1005_v27 }
  0xfa   : > { %v1019_v43 = vmax.f32 %v1011_v40, %v1013_v38 }
 0x125   : > { %v851_v51 = vpop.f32.mrf.mxu0 }
 0x126   : > { %v852_v62 = vadd.f32 %v851_v51, %v662_v54  ;;  %v1101_v51 = vld [vmem:[#allocation7 + $0x8] sm:$0xff]  ;;  %v1155_v54 = vld [vmem:[#allocation8 + $0x78] sm:$0xff] }
 0x127   : > { %1131 = vmatpush.msra.mxu2 %v1101_v51  ;;  %1157 = vmatpush.msra.mxu3 %v1155_v54 }
 0x128   : > { %v871_v59 = vpop.f32.mrf.mxu1 }
 0x129   : > { %v891_v5 = vpop.f32.mrf.mxu2  ;;  %v872_v8 = vadd.f32 %v871_v59, %v852_v62  ;;  %1132 = vmatpush.msra.mxu2 %v1100_v53  ;;  %1158 = vmatpush.msra.mxu3 %v1154_v55  ;;  %v1150_v59 = vld [vmem:[#allocation8 + $0x50] sm:$0xff]  ;;  %v1147_v62 = vld [vmem:[#allocation8 + $0x38] sm:$0xff] }
 0x12a   : > { %v892_v47 = vadd.f32 %v891_v5, %v663_v3 }
 0x12b   : > { %v1006_v18 = vmul.f32 0.01, %v872_v8  ;;  %vm998_vm2 = vcmp.gt.f32.partialorder %v872_v8, 0.0  ;;  %1159 = vmatpush.msra.mxu3 %v1153_v56 }
 0x12c   : > { %v911_v11 = vpop.f32.mrf.mxu3 }
 0x12d   : > { %v912_v24 = vadd.f32 %v911_v11, %v892_v47  ;;  %v1014_v28 = vsel %vm998_vm2, %v872_v8, %v1006_v18  ;;  %1160 = vmatpush.msra.mxu3 %v1152_v57  ;;  %v1141_v11 = vld [vmem:[#allocation8 + $0x8] sm:$0xff] }
 0x12f   : > { %v931_v12 = vpop.f32.mrf.mxu0  ;;  %v1007_v35 = vmul.f32 0.01, %v912_v24  ;;  %vm999_vm6 = vcmp.gt.f32.partialorder %v912_v24, 0.0  ;;  %1161 = vmatpush.msra.mxu3 %v1151_v58 }
 0x130   : > { %v932_v15 = vadd.f32 %v931_v12, %v664_v4  ;;  %v1143_v4 = vld [vmem:[#allocation8 + $0x18] sm:$0xff]  ;;  %v1140_v12 = vld [vmem:[#allocation8] sm:$0xff] }
 0x131   : > { %v951_v52 = vpop.f32.mrf.mxu1  ;;  %v1015_v41 = vsel %vm999_vm6, %v912_v24, %v1007_v35  ;;  %1162 = vmatpush.msra.mxu3 %v1150_v59 }
 0x132   : > { %v952_v19 = vadd.f32 %v951_v52, %v932_v15 }
 0x133   : > { %1163 = vmatpush.msra.mxu3 %v1149_v60 }
 0x134   : > { %vm1000_vm3 = vcmp.gt.f32.partialorder %v952_v19, 0.0  ;;  %v1008_v25 = vmul.f32 0.01, %v952_v19 }
 0x135   : > { %v971_v26 = vpop.f32.mrf.mxu2  ;;  %1164 = vmatpush.msra.mxu3 %v1148_v61 }
 0x136   : > { %v1016_v29 = vsel %vm1000_vm3, %v952_v19, %v1008_v25  ;;  %v972_v30 = vadd.f32 %v971_v26, %v665_v20 }
 0x137   : > { %v1020_v32 = vmax.f32 %v1014_v28, %v1016_v29  ;;  %v991_v33 = vpop.f32.mrf.mxu3  ;;  %1165 = vmatpush.msra.mxu3 %v1147_v62 }
 0x138   : > { %v992_v36 = vadd.f32 %v991_v33, %v972_v30 }
 0x139   : > { %v1022_v37 = vmax.f32 %v1018_v31, %v1020_v32  ;;  %1166 = vmatpush.msra.mxu3 %v1146_v63 }
 0x13a   : > { %vm1001_vm7 = vcmp.gt.f32.partialorder %v992_v36, 0.0  ;;  %v1009_v39 = vmul.f32 0.01, %v992_v36 }
 0x13b   : > { %1073 = vmatmul.f32.vlgmr.msra.gmra.mxu0 %v1022_v37  ;;  %1167 = vmatpush.msra.mxu3 %v1145_v0 }
 0x13c   : > { %v1017_v42 = vsel %vm1001_vm7, %v992_v36, %v1009_v39 }
 0x13d   : > { %v1021_v44 = vmax.f32 %v1015_v41, %v1017_v42  ;;  %1168 = vmatpush.msra.mxu3 %v1144_v1 }
 0x13f   : > { %v1023_v45 = vmax.f32 %v1019_v43, %v1021_v44  ;;  %1169 = vmatpush.msra.mxu3 %v1143_v4 }
 0x141   : > { %1093 = vmatmul.f32.vlgmr.msra.gmra.mxu1 %v1023_v45  ;;  %1170 = vmatpush.msra.mxu3 %v1142_v10 }
 0x143   : > { %1171 = vmatpush.msra.mxu3 %v1141_v11 }
 0x145   : > { %1172 = vmatpush.msra.mxu3 %v1140_v12 }
 0x1b8   : > { %v1074_v3 = vpop.f32.mrf.mxu0 }
 0x1b9   : > { %v1075_v5 = vadd.f32 %v1074_v3, %v1056_v2 }
 0x1be   : > { %v1094_v6 = vpop.f32.mrf.mxu1 }
 0x1bf   : > { %v1095_v7 = vadd.f32 %v1094_v6, %v1075_v5 }
 0x1c1   : > { %vm1097_vm8 = vcmp.gt.f32.partialorder %v1095_v7, 0.0  ;;  %v1098_v8 = vmul.f32 0.01, %v1095_v7 }
 0x1c3   : > { %v1099_v9 = vsel %vm1097_vm8, %v1095_v7, %v1098_v8 }
 0x1c4   : > { %1133 = vmatmul.f32.vlgmr.msra.gmra.mxu2 %v1099_v9 }
 0x247   : > { %v1134_v14 = vpop.f32.mrf.mxu2 }
 0x248   : > { %v1135_v47 = vadd.f32 %v1134_v14, %v1116_v13 }
 0x24a   : > { %vm1137_vm9 = vcmp.gt.f32.partialorder %v1135_v47, 0.0  ;;  %v1138_v15 = vmul.f32 0.01, %v1135_v47 }
 0x24c   : > { %v1139_v52 = vsel %vm1137_vm9, %v1135_v47, %v1138_v15 }
 0x24d   : > { %1173 = vmatmul.f32.vlgmr.msra.gmra.mxu3 %v1139_v52 }
 0x2d0   : > { %v1174_v17 = vpop.f32.mrf.mxu3 }
 0x2d1   : > { %v1175_v18 = vadd.f32 %v1174_v17, %v1156_v16 }
 0x2d3   : > { %v1319_v19 = vmul.f32 -1.442695, %v1175_v18 }
 0x2d5   : > { %1406 = vpow2.f32 %v1319_v19 }
 0x2db   : > { %v1407_v20 = vpop.eup %1406 }
 0x2dc   : > { %v1180_v21 = vadd.f32 1.0, %v1407_v20 }
 0x2de   : > { %1408 = vrcp.f32 %v1180_v21  ;;  %v1192_v25 = vand.u32 2147483648, %v1180_v21  ;;  %v1190_v27 = vand.u32 2147483647, %v1180_v21  ;;  %vm1186_vm11 = vweird.f32 %v1180_v21 }
 0x2e0   : > { %v1193_v29 = vor.u32 1.1754944e-38, %v1192_v25  ;;  %vm1191_vm13 = vcmp.eq.f32.partialorder %v1190_v27, 8.507059e+37 }
 0x2e4   : > { %v1409_v22 = vpop.eup %1408 }
 0x2e5   : > { %v1182_v23 = vmul.f32 %v1409_v22, %v1180_v21  ;;  %vm1187_vm10 = vweird.f32 %v1409_v22 }
 0x2e6   : > { %vm1188_vm12 = vmor %vm1186_vm11, %vm1187_vm10 }
 0x2e7   : > { %v1183_v24 = vsub.f32 1.0, %v1182_v23 }
 0x2e9   : > { %v1184_v26 = vmul.f32 %v1409_v22, %v1183_v24 }
 0x2eb   : > { %v1185_v28 = vadd.f32 %v1409_v22, %v1184_v26 }
 0x2ed   : > { %v1189_v30 = vsel %vm1188_vm12, %v1409_v22, %v1185_v28 }
 0x2ee   : > { %v1194_v31 = vsel %vm1191_vm13, %v1193_v29, %v1189_v30 }
 0x2ef   : > { %1196 = vst [vmem:[%s389_s22] sm:$0x1] %v1194_v31 }
 0x2f0   : > { %1557 = shalt.err (!%p1554_p8)
}
 0x2f1   : > { %1338 = dma.vmem_to_hbm [thread:$0]  (%p1702_p5), %s1209_s1, 16, %s1211_s3, %s1198_s11  }
 0x2f2 PF: > { %p1365_p9 = scmp.ge.s32.totalorder %s1604_s12, 2  ;;  %s1222_s17 = sand.u32 1, %s1592_s30  }
 0x2f3   : > { %s1223_s23 = scalar_lea.sflag [#allocation4], %s1222_s17 }
 0x2f4   : > { %p1354_p10 = pnand %p1365_p9, %p1706_p6 }
 0x2f6   : > { %p1355_p11 = pneg %p1354_p10 }
 0x2f8   : > { %1587 = dma.done.wait (%p1355_p11), %s1223_s23, 16  }
 0x2f9   : > { %1589 = vsyncadd (%p1355_p11), %s1223_s23, 4294967280  ;;  %s1870_s12 = sld [smem:[#allocation16_spill]]  ;;  %s1873_s30 = smov %s1596_s10 }
 0x2fa   : > { %s1871_s25 = sld [smem:[#allocation15_spill]] }
 0x2fb   : > { %s1872_s11 = sld [smem:[#allocation17_spill]] }
 0x2ff   : > { %p22_p12 = scmp.ge.s32.totalorder %s1870_s12, 4  }
 0x300   : > { %s1874_s10 = smov %s1871_s25 }
 0x301   :  { %24 = sbr.rel (!%p22_p12) target bundleno = 9 (0x9), region = 108 }
 0x306   :  { %1228 = vsyncpa [#allocation3], 1 }
 0x307   :  { %1230 = vsyncpa [#allocation3 + $0x1], 1 }
 0x308   :  { %1231 = vsyncpa [#allocation6], 1 }
 0x309   :  { %1232 = vsyncpa [#allocation9], 1 }
 0x30a   :  { %1233 = vsyncpa [#allocation4], 1 }
 0x30b   :  { %1235 = vsyncpa [#allocation4 + $0x1], 1 }

</bundles_post_ra>
